<compile_context>
chip_gen: v7x
topology: tpu7x:2x2x1
jax: 0.10.0
libtpu: 0.0.40
codegen_flags: <defaults>
</compile_context>

<pallas_src>
import functools
import math

import jax
import jax.numpy as jnp
from jax.experimental import pallas as pl
from jax.experimental.pallas import tpu as pltpu


# ---------------------------------------------------------------------------
# Tiling / VMEM helpers
# ---------------------------------------------------------------------------

def _pick_tile(dim, target, align):
    """Largest tile <= target that divides `dim` and is a multiple of `align`;
    falls back to the full dim (allowed by the (8,128) rule) when small/odd."""
    if dim <= target or dim % align != 0:
        return dim
    t = (target // align) * align
    while dim % t != 0:
        t -= align
    return t


def _row_tiling(M, target=512):
    """Row tile size and padded row count (padding instead of a huge fallback
    block keeps tiles lane/sublane aligned and pipelined)."""
    if M >= target:
        tm = target
    else:
        tm = ((M + 7) // 8) * 8
    m_pad = ((M + tm - 1) // tm) * tm
    return tm, m_pad


def _vmem_limit(nbytes):
    """Scoped-VMEM request: measured need + slack, clamped to v7x physical."""
    return int(min(max(nbytes + (4 << 20), 24 << 20), 64 << 20))


def _bf16(w):
    return w.astype(jnp.bfloat16)


# ---------------------------------------------------------------------------
# Kernels
# ---------------------------------------------------------------------------

def _matmul_kernel(x_ref, w_ref, b_ref, o_ref, acc_ref, *, act):
    # grid = (M/tm, N/tn, K/tk); accumulate over K in f32 scratch; bf16 MXU ops.
    @pl.when(pl.program_id(2) == 0)
    def _():
        acc_ref[...] = jnp.zeros_like(acc_ref)

    acc_ref[...] += jnp.dot(x_ref[...].astype(jnp.bfloat16), w_ref[...],
                            preferred_element_type=jnp.float32)

    @pl.when(pl.program_id(2) == pl.num_programs(2) - 1)
    def _():
        y = acc_ref[...] + b_ref[...]
        if act == "relu":
            y = jnp.maximum(y, 0.0)
        o_ref[...] = y.astype(o_ref.dtype)


def _attn_core(q2d, k2d, v2d, res, wo_ref, bo_ref, g_ref, b_ref, o_ref,
               *, H, scale, eps, causal, q_offset):
    """One (batch, query-block): softmax attention over all heads, heads
    concatenated then projected with a single matmul, + residual + LayerNorm.
    q2d:[tq,D] bf16, k2d/v2d:[S,D] bf16, res:[tq,D] f32."""
    Tq, D = q2d.shape
    S = k2d.shape[0]
    Dh = D // H

    if causal:
        row = q_offset + jax.lax.broadcasted_iota(jnp.int32, (Tq, S), 0)
        col = jax.lax.broadcasted_iota(jnp.int32, (Tq, S), 1)
        neg = jnp.float32(-1e30)        # finite mask value, f32 score space

    heads = []
    for h in range(H):                  # static loop; all heads in one call
        lo = h * Dh
        qh = q2d[:, lo:lo + Dh]         # (tq, Dh) bf16
        kh = k2d[:, lo:lo + Dh]         # (S, Dh)  bf16
        vh = v2d[:, lo:lo + Dh]         # (S, Dh)  bf16
        s = jax.lax.dot_general(qh, kh, (((1,), (1,)), ((), ())),
                                preferred_element_type=jnp.float32) * scale
        if causal:
            s = jnp.where(col > row, neg, s)
        m = jnp.max(s, axis=-1, keepdims=True)
        p = jnp.exp(s - m)
        p = p * pl.reciprocal(jnp.sum(p, axis=-1, keepdims=True), approx=True)
        # bf16 probabilities for the P@V matmul (f32 accumulation on the MXU)
        heads.append(jnp.dot(p.astype(v2d.dtype), vh,
                             preferred_element_type=jnp.float32))

    o_heads = jnp.concatenate(heads, axis=-1)            # (tq, D) f32
    proj = jnp.dot(o_heads.astype(jnp.bfloat16), wo_ref[...],
                   preferred_element_type=jnp.float32)   # single K=D matmul

    y = proj + bo_ref[...] + res
    mu = jnp.mean(y, axis=-1, keepdims=True)
    yc = y - mu
    var = jnp.mean(yc * yc, axis=-1, keepdims=True)
    o_ref[...] = (yc * jax.lax.rsqrt(var + eps) * g_ref[...] + b_ref[...]
                  ).astype(o_ref.dtype)


def _self_attn_ln_kernel(qkv_ref, res_ref, wo_ref, bo_ref, g_ref, b_ref, o_ref,
                         *, H, tq, scale, eps):
    D = o_ref.shape[-1]
    q0 = pl.multiple_of(pl.program_id(1) * tq, tq)
    qrows = qkv_ref[pl.ds(q0, tq), :]       # (tq, 3D) — query rows of this block
    kv_all = qkv_ref[...]                   # (L, 3D) — full K/V, resident per batch
    _attn_core(qrows[:, :D], kv_all[:, D:2 * D], kv_all[:, 2 * D:],
               res_ref[...], wo_ref, bo_ref, g_ref, b_ref, o_ref,
               H=H, scale=scale, eps=eps, causal=True, q_offset=q0)


def _cross_attn_ln_kernel(q_ref, kv_ref, res_ref, wo_ref, bo_ref, g_ref, b_ref,
                          o_ref, *, H, scale, eps):
    D = o_ref.shape[-1]
    kv = kv_ref[...]                        # (S, 2D) — fused KV projection
    _attn_core(q_ref[...], kv[:, :D], kv[:, D:],
               res_ref[...], wo_ref, bo_ref, g_ref, b_ref, o_ref,
               H=H, scale=scale, eps=eps, causal=False, q_offset=0)


def _ffn_ln_kernel(x_ref, w1_ref, b1_ref, w2_ref, b2_ref, g_ref, b_ref, o_ref,
                   *, eps, f_chunk):
    # conv1x1 -> ReLU -> conv1x1 -> residual -> LayerNorm; the hidden dim is
    # processed in chunks so the (tm, F) intermediate never materializes.
    x = x_ref[...]                                   # (tm, D) f32
    xb = x.astype(jnp.bfloat16)
    F = w1_ref.shape[1]
    acc = jnp.zeros(o_ref.shape, jnp.float32)
    for c0 in range(0, F, f_chunk):                  # static chunk loop
        c1 = c0 + f_chunk
        h = jnp.dot(xb, w1_ref[:, c0:c1],
                    preferred_element_type=jnp.float32) + b1_ref[:, c0:c1]
        h = jnp.maximum(h, 0.0).astype(jnp.bfloat16)
        acc = acc + jnp.dot(h, w2_ref[c0:c1, :],
                            preferred_element_type=jnp.float32)
    y = acc + b2_ref[...] + x
    mu = jnp.mean(y, axis=-1, keepdims=True)
    yc = y - mu
    var = jnp.mean(yc * yc, axis=-1, keepdims=True)
    o_ref[...] = (yc * jax.lax.rsqrt(var + eps) * g_ref[...] + b_ref[...]
                  ).astype(o_ref.dtype)


def _ln_proj_kernel(x_ref, g_ref, b_ref, w_ref, pb_ref, o_ref, *, eps):
    # final LayerNorm + projection (output padded to a lane-dense width).
    x = x_ref[...]
    mu = jnp.mean(x, axis=-1, keepdims=True)
    xc = x - mu
    var = jnp.mean(xc * xc, axis=-1, keepdims=True)
    xn = xc * jax.lax.rsqrt(var + eps) * g_ref[...] + b_ref[...]
    o_ref[...] = (jnp.dot(xn.astype(jnp.bfloat16), w_ref[...],
                          preferred_element_type=jnp.float32)
                  + pb_ref[...]).astype(o_ref.dtype)


# ---------------------------------------------------------------------------
# Wrappers
# ---------------------------------------------------------------------------

def pallas_linear(x, w, b, act=None, out_dtype=jnp.float32):
    """x: [..., K] @ w: [K, N] + b: [N] — tiled/pipelined bf16-MXU matmul."""
    lead = x.shape[:-1]
    K = x.shape[-1]
    N = w.shape[1]
    M = int(math.prod(lead))
    tm, m_pad = _row_tiling(M, 512)
    tn = _pick_tile(N, 512, 128)
    tk = _pick_tile(K, 512, 128)
    x2d = x.reshape(M, K)
    if m_pad != M:
        x2d = jnp.pad(x2d, ((0, m_pad - M), (0, 0)))
    grid = (m_pad // tm, N // tn, K // tk)
    out = pl.pallas_call(
        functools.partial(_matmul_kernel, act=act),
        out_shape=jax.ShapeDtypeStruct((m_pad, N), out_dtype),
        grid=grid,
        in_specs=[pl.BlockSpec((tm, tk), lambda i, j, k: (i, k)),
                  pl.BlockSpec((tk, tn), lambda i, j, k: (k, j)),
                  pl.BlockSpec((1, tn), lambda i, j, k: (0, j))],
        out_specs=pl.BlockSpec((tm, tn), lambda i, j, k: (i, j)),
        scratch_shapes=[pltpu.VMEM((tm, tn), jnp.float32)],
        compiler_params=pltpu.CompilerParams(
            dimension_semantics=("parallel", "parallel", "arbitrary"),
            vmem_limit_bytes=_vmem_limit(
                2 * (tm * tk * 4 + tk * tn * 2 + tm * tn * 4) + tm * tn * 4)),
        cost_estimate=pl.CostEstimate(
            flops=int(2 * m_pad * N * K), transcendentals=0,
            bytes_accessed=int(m_pad * K * 4 + K * N * 2 + m_pad * N * 4)),
    )(x2d, _bf16(w), b.reshape(1, N))
    if m_pad != M:
        out = out[:M]
    return out.reshape(*lead, N)


def pallas_self_attn_block(x, ap, ln_g, ln_b, n_heads, eps=1e-5):
    """norm1(x + SelfAttention(x)): fused QKV proj (bf16 output), then one
    kernel per (batch, q-block) doing attention + out-proj + residual + LN."""
    B, L, D = x.shape
    H = n_heads
    Dh = D // H
    qkv = pallas_linear(x, ap["w_qkv"], ap["b_qkv"],
                        out_dtype=jnp.bfloat16)          # [B, L, 3D] bf16
    tq = _pick_tile(L, 256, 8)
    nq = L // tq
    scale = 1.0 / math.sqrt(Dh)
    need = 2 * (L * 3 * D * 2 + 2 * tq * D * 4 + D * D * 2 + 4 * D * 4)
    return pl.pallas_call(
        functools.partial(_self_attn_ln_kernel, H=H, tq=tq, scale=scale, eps=eps),
        out_shape=jax.ShapeDtypeStruct((B, L, D), jnp.float32),
        grid=(B, nq),
        in_specs=[pl.BlockSpec((None, L, 3 * D), lambda b, q: (b, 0, 0)),
                  pl.BlockSpec((None, tq, D), lambda b, q: (b, q, 0)),
                  pl.BlockSpec((D, D), lambda b, q: (0, 0)),
                  pl.BlockSpec((1, D), lambda b, q: (0, 0)),
                  pl.BlockSpec((1, D), lambda b, q: (0, 0)),
                  pl.BlockSpec((1, D), lambda b, q: (0, 0))],
        out_specs=pl.BlockSpec((None, tq, D), lambda b, q: (b, q, 0)),
        compiler_params=pltpu.CompilerParams(
            dimension_semantics=("parallel", "parallel"),
            vmem_limit_bytes=_vmem_limit(need)),
        cost_estimate=pl.CostEstimate(
            flops=int(B * (4 * L * L * D + 2 * L * D * D)),
            transcendentals=int(B * H * L * L),
            bytes_accessed=int(B * L * 3 * D * 2 + 2 * B * L * D * 4 + D * D * 2)),
    )(qkv, x, _bf16(ap["wo"]), ap["bo"].reshape(1, D),
      ln_g.reshape(1, D), ln_b.reshape(1, D))


def pallas_cross_attn_block(x, cross, ap, ln_g, ln_b, n_heads, eps=1e-5):
    """norm2(x + CrossAttention(x, cross)): fused KV proj, fused out-proj/LN."""
    B, L, D = x.shape
    S = cross.shape[1]
    H = n_heads
    Dh = D // H
    q = pallas_linear(x, ap["wq"], ap["bq"], out_dtype=jnp.bfloat16)        # [B,L,D]
    kv = pallas_linear(cross, ap["w_kv"], ap["b_kv"], out_dtype=jnp.bfloat16)  # [B,S,2D]
    tq = _pick_tile(L, 256, 8)
    nq = L // tq
    scale = 1.0 / math.sqrt(Dh)
    need = 2 * (S * 2 * D * 2 + tq * D * 2 + 2 * tq * D * 4 + D * D * 2 + 4 * D * 4)
    return pl.pallas_call(
        functools.partial(_cross_attn_ln_kernel, H=H, scale=scale, eps=eps),
        out_shape=jax.ShapeDtypeStruct((B, L, D), jnp.float32),
        grid=(B, nq),
        in_specs=[pl.BlockSpec((None, tq, D), lambda b, q: (b, q, 0)),
                  pl.BlockSpec((None, S, 2 * D), lambda b, q: (b, 0, 0)),
                  pl.BlockSpec((None, tq, D), lambda b, q: (b, q, 0)),
                  pl.BlockSpec((D, D), lambda b, q: (0, 0)),
                  pl.BlockSpec((1, D), lambda b, q: (0, 0)),
                  pl.BlockSpec((1, D), lambda b, q: (0, 0)),
                  pl.BlockSpec((1, D), lambda b, q: (0, 0))],
        out_specs=pl.BlockSpec((None, tq, D), lambda b, q: (b, q, 0)),
        compiler_params=pltpu.CompilerParams(
            dimension_semantics=("parallel", "parallel"),
            vmem_limit_bytes=_vmem_limit(need)),
        cost_estimate=pl.CostEstimate(
            flops=int(B * (4 * L * S * D + 2 * L * D * D)),
            transcendentals=int(B * H * L * S),
            bytes_accessed=int(B * (L * D * 2 + S * 2 * D * 2 + 2 * L * D * 4) + D * D * 2)),
    )(q, kv, x, _bf16(ap["wo"]), ap["bo"].reshape(1, D),
      ln_g.reshape(1, D), ln_b.reshape(1, D))


def pallas_ffn_ln(x, w1, b1, w2, b2, g, b, eps=1e-5):
    """norm3(x + conv2(relu(conv1(x)))) — FFN + residual + LN in one kernel,
    hidden dim chunked, bf16 weights."""
    B, L, D = x.shape
    F = w1.shape[1]
    M = B * L
    tm, m_pad = _row_tiling(M, 512)
    f_chunk = 512 if (F > 512 and F % 512 == 0) else F
    x2d = x.reshape(M, D)
    if m_pad != M:
        x2d = jnp.pad(x2d, ((0, m_pad - M), (0, 0)))
    need = 2 * (2 * tm * D * 4) + (D * F + F * D) * 2 * 2 + (F + 3 * D) * 4
    out = pl.pallas_call(
        functools.partial(_ffn_ln_kernel, eps=eps, f_chunk=f_chunk),
        out_shape=jax.ShapeDtypeStruct((m_pad, D), jnp.float32),
        grid=(m_pad // tm,),
        in_specs=[pl.BlockSpec((tm, D), lambda i: (i, 0)),
                  pl.BlockSpec((D, F), lambda i: (0, 0)),
                  pl.BlockSpec((1, F), lambda i: (0, 0)),
                  pl.BlockSpec((F, D), lambda i: (0, 0)),
                  pl.BlockSpec((1, D), lambda i: (0, 0)),
                  pl.BlockSpec((1, D), lambda i: (0, 0)),
                  pl.BlockSpec((1, D), lambda i: (0, 0))],
        out_specs=pl.BlockSpec((tm, D), lambda i: (i, 0)),
        compiler_params=pltpu.CompilerParams(
            dimension_semantics=("parallel",),
            vmem_limit_bytes=_vmem_limit(need)),
        cost_estimate=pl.CostEstimate(
            flops=int(4 * m_pad * D * F), transcendentals=0,
            bytes_accessed=int(2 * m_pad * D * 4 + (D * F + F * D) * 2)),
    )(x2d, _bf16(w1), b1.reshape(1, F), _bf16(w2), b2.reshape(1, D),
      g.reshape(1, D), b.reshape(1, D))
    if m_pad != M:
        out = out[:M]
    return out.reshape(B, L, D)


def pallas_ln_proj(x, g, b, w, pb, eps=1e-5):
    """Final LayerNorm + Linear projection; output padded to lane-dense width."""
    B, L, D = x.shape
    c_out = w.shape[1]
    Np = max(128, ((c_out + 127) // 128) * 128)
    if Np != c_out:
        w = jnp.pad(w, ((0, 0), (0, Np - c_out)))
        pb = jnp.pad(pb, ((0, Np - c_out),))
    M = B * L
    tm, m_pad = _row_tiling(M, 512)
    x2d = x.reshape(M, D)
    if m_pad != M:
        x2d = jnp.pad(x2d, ((0, m_pad - M), (0, 0)))
    out = pl.pallas_call(
        functools.partial(_ln_proj_kernel, eps=eps),
        out_shape=jax.ShapeDtypeStruct((m_pad, Np), jnp.float32),
        grid=(m_pad // tm,),
        in_specs=[pl.BlockSpec((tm, D), lambda i: (i, 0)),
                  pl.BlockSpec((1, D), lambda i: (0, 0)),
                  pl.BlockSpec((1, D), lambda i: (0, 0)),
                  pl.BlockSpec((D, Np), lambda i: (0, 0)),
                  pl.BlockSpec((1, Np), lambda i: (0, 0))],
        out_specs=pl.BlockSpec((tm, Np), lambda i: (i, 0)),
        compiler_params=pltpu.CompilerParams(
            dimension_semantics=("parallel",),
            vmem_limit_bytes=_vmem_limit(
                2 * (tm * D * 4 + tm * Np * 4) + D * Np * 2 * 2)),
    )(x2d, g.reshape(1, D), b.reshape(1, D), _bf16(w), pb.reshape(1, Np))
    return out[:M, :c_out].reshape(B, L, c_out)


def decoder_layer_forward(x, cross, lp, n_heads):
    x = pallas_self_attn_block(x, lp["self_attn"], lp["ln1_g"], lp["ln1_b"], n_heads)
    x = pallas_cross_attn_block(x, cross, lp["cross_attn"], lp["ln2_g"], lp["ln2_b"], n_heads)
    return pallas_ffn_ln(x, lp["w1"], lp["b1"], lp["w2"], lp["b2"],
                         lp["ln3_g"], lp["ln3_b"])


def decoder_forward(params, x, cross, n_heads):
    for lp in params["layers"]:
        x = decoder_layer_forward(x, cross, lp, n_heads)
    return pallas_ln_proj(x, params["norm_g"], params["norm_b"],
                          params["proj_w"], params["proj_b"])


# ---------------------------------------------------------------------------
# Pure-JAX reference (for correctness check)
# ---------------------------------------------------------------------------

def _ref_attn(q_in, kv_in, wq, bq, wk, bk, wv, bv, wo, bo, H, causal):
    B, L, D = q_in.shape
    S = kv_in.shape[1]
    Dh = D // H
    q = (q_in @ wq + bq).reshape(B, L, H, Dh)
    k = (kv_in @ wk + bk).reshape(B, S, H, Dh)
    v = (kv_in @ wv + bv).reshape(B, S, H, Dh)
    s = jnp.einsum("blhe,bshe->bhls", q, k) / math.sqrt(Dh)
    if causal:
        mask = jnp.triu(jnp.ones((L, S), dtype=bool), k=1)
        s = jnp.where(mask[None, None], -jnp.inf, s)
    a = jax.nn.softmax(s, axis=-1)
    o = jnp.einsum("bhls,bshe->blhe", a, v).reshape(B, L, D)
    return o @ wo + bo


def _ref_ln(x, g, b, eps=1e-5):
    mu = jnp.mean(x, axis=-1, keepdims=True)
    var = jnp.mean((x - mu) ** 2, axis=-1, keepdims=True)
    return (x - mu) * jax.lax.rsqrt(var + eps) * g + b


def _ref_decoder(params, x, cross, H):
    for lp in params["layers"]:
        sa = lp["self_attn"]
        wq, wk, wv = jnp.split(sa["w_qkv"], 3, axis=1)
        bq, bk, bv = jnp.split(sa["b_qkv"], 3)
        x = _ref_ln(x + _ref_attn(x, x, wq, bq, wk, bk, wv, bv,
                                  sa["wo"], sa["bo"], H, True),
                    lp["ln1_g"], lp["ln1_b"])
        ca = lp["cross_attn"]
        wk2, wv2 = jnp.split(ca["w_kv"], 2, axis=1)
        bk2, bv2 = jnp.split(ca["b_kv"], 2)
        x = _ref_ln(x + _ref_attn(x, cross, ca["wq"], ca["bq"], wk2, bk2,
                                  wv2, bv2, ca["wo"], ca["bo"], H, False),
                    lp["ln2_g"], lp["ln2_b"])
        y = jnp.maximum(x @ lp["w1"] + lp["b1"], 0.0)
        y = y @ lp["w2"] + lp["b2"]
        x = _ref_ln(x + y, lp["ln3_g"], lp["ln3_b"])
    x = _ref_ln(x, params["norm_g"], params["norm_b"])
    return x @ params["proj_w"] + params["proj_b"]


# ---------------------------------------------------------------------------
# Deterministic parameter init (QKV / KV stored pre-fused)
# ---------------------------------------------------------------------------

def _init_self_attn(key, d):
    ks = jax.random.split(key, 4)
    return dict(
        w_qkv=jax.random.normal(ks[0], (d, 3 * d), jnp.float32) * 0.05,
        b_qkv=jax.random.normal(ks[1], (3 * d,), jnp.float32) * 0.01,
        wo=jax.random.normal(ks[2], (d, d), jnp.float32) * 0.05,
        bo=jax.random.normal(ks[3], (d,), jnp.float32) * 0.01,
    )


def _init_cross_attn(key, d):
    ks = jax.random.split(key, 6)
    return dict(
        wq=jax.random.normal(ks[0], (d, d), jnp.float32) * 0.05,
        bq=jax.random.normal(ks[1], (d,), jnp.float32) * 0.01,
        w_kv=jax.random.normal(ks[2], (d, 2 * d), jnp.float32) * 0.05,
        b_kv=jax.random.normal(ks[3], (2 * d,), jnp.float32) * 0.01,
        wo=jax.random.normal(ks[4], (d, d), jnp.float32) * 0.05,
        bo=jax.random.normal(ks[5], (d,), jnp.float32) * 0.01,
    )


def init_decoder_params(key, num_layers, d_model, d_ff, c_out):
    layers = []
    for _ in range(num_layers):
        key, k_sa, k_ca, k1, k2, k3, k4 = jax.random.split(key, 7)
        layers.append(dict(
            self_attn=_init_self_attn(k_sa, d_model),
            cross_attn=_init_cross_attn(k_ca, d_model),
            w1=jax.random.normal(k1, (d_model, d_ff), jnp.float32) * 0.05,
            b1=jax.random.normal(k2, (d_ff,), jnp.float32) * 0.01,
            w2=jax.random.normal(k3, (d_ff, d_model), jnp.float32) * 0.05,
            b2=jax.random.normal(k4, (d_model,), jnp.float32) * 0.01,
            ln1_g=jnp.ones((d_model,), jnp.float32), ln1_b=jnp.zeros((d_model,), jnp.float32),
            ln2_g=jnp.ones((d_model,), jnp.float32), ln2_b=jnp.zeros((d_model,), jnp.float32),
            ln3_g=jnp.ones((d_model,), jnp.float32), ln3_b=jnp.zeros((d_model,), jnp.float32),
        ))
    key, kp, kb = jax.random.split(key, 3)
    return dict(
        layers=layers,
        norm_g=jnp.ones((d_model,), jnp.float32),
        norm_b=jnp.zeros((d_model,), jnp.float32),
        proj_w=jax.random.normal(kp, (d_model, c_out), jnp.float32) * 0.05,
        proj_b=jax.random.normal(kb, (c_out,), jnp.float32) * 0.01,
    )


# TODO(synk): dropout layers are identity here (eval-mode semantics); training
# mode stochastic dropout is not reproduced.

if __name__ == "__main__":
    B, L, S = 2, 8, 12          # batch, decoder seq, encoder seq
    d_model, n_heads, d_ff = 32, 4, 64
    c_out, num_layers = 7, 2

    key = jax.random.PRNGKey(0)
    k_x, k_c, k_p = jax.random.split(key, 3)
    x = jax.random.normal(k_x, (B, L, d_model), jnp.float32)
    cross = jax.random.normal(k_c, (B, S, d_model), jnp.float32)
    params = init_decoder_params(k_p, num_layers, d_model, d_ff, c_out)

    fwd = jax.jit(functools.partial(decoder_forward, n_heads=n_heads))
    out = jax.block_until_ready(fwd(params, x, cross))

    ref = _ref_decoder(params, x, cross, n_heads)
    err = float(jnp.max(jnp.abs(out - ref)))
    assert out.shape == (B, L, c_out), out.shape
    assert jnp.all(jnp.isfinite(out)), "non-finite output"
    assert err < 5e-2, f"mismatch vs reference: {err}"
    print("KERNEL_OK")
</pallas_src>

<mosaic_0001>
module attributes {stable_mosaic.version = 11 : i64} {
  func.func @_matmul_kernel(%arg0: i32, %arg1: i32, %arg2: i32, %arg3: memref<24x32xf32, #tpu.memory_space<vmem>>, %arg4: memref<32x64xbf16, #tpu.memory_space<vmem>>, %arg5: memref<1x64xf32, #tpu.memory_space<vmem>>, %arg6: memref<24x64xbf16, #tpu.memory_space<vmem>>, %arg7: memref<24x64xf32, #tpu.memory_space<vmem>>) attributes {dimension_semantics = [#tpu.dimension_semantics<parallel>, #tpu.dimension_semantics<parallel>, #tpu.dimension_semantics<arbitrary>], iteration_bounds = array<i64: 1, 1, 1>, scalar_prefetch = 0 : i64, scratch_operands = 1 : i64, tpu.core_type = #tpu.core_type<tc>, window_params = [{transform_indices = @transform_0, window_bounds = array<i64: 24, 32>}, {transform_indices = @transform_1, window_bounds = array<i64: 32, 64>}, {transform_indices = @transform_2, window_bounds = array<i64: 1, 64>}, {transform_indices = @transform_3, window_bounds = array<i64: 24, 64>}]} {
    %c0_i32 = arith.constant 0 : i32
    %0 = arith.cmpi eq, %arg2, %c0_i32 : i32
    %1 = arith.extui %0 : i1 to i32
    %c0_i32_0 = arith.constant 0 : i32
    %2 = arith.cmpi ne, %1, %c0_i32_0 : i32
    scf.if %2 {
      %cst_10 = arith.constant 0.000000e+00 : f32
      %13 = vector.broadcast %cst_10 : f32 to vector<24x64xf32>
      %c0_11 = arith.constant 0 : index
      %c0_12 = arith.constant 0 : index
      %14 = vector.load %arg7[%c0_11, %c0_12] : memref<24x64xf32, #tpu.memory_space<vmem>>, vector<24x64xf32>
      tpu.vector_store %arg7[%c0_11, %c0_12], %13 {strides = array<i32>} : memref<24x64xf32, #tpu.memory_space<vmem>>, vector<24x64xf32>,
    } else {
    }
    %c0 = arith.constant 0 : index
    %c0_1 = arith.constant 0 : index
    %3 = vector.load %arg7[%c0, %c0_1] : memref<24x64xf32, #tpu.memory_space<vmem>>, vector<24x64xf32>
    %c0_2 = arith.constant 0 : index
    %c0_3 = arith.constant 0 : index
    %4 = vector.load %arg3[%c0_2, %c0_3] : memref<24x32xf32, #tpu.memory_space<vmem>>, vector<24x32xf32>
    %5 = arith.truncf %4 : vector<24x32xf32> to vector<24x32xbf16>
    %c0_4 = arith.constant 0 : index
    %c0_5 = arith.constant 0 : index
    %6 = vector.load %arg4[%c0_4, %c0_5] : memref<32x64xbf16, #tpu.memory_space<vmem>>, vector<32x64xbf16>
    %cst = arith.constant dense<0.000000e+00> : vector<24x64xf32>
    %7 = tpu.matmul %5, %6, %cst {dimension_numbers = #tpu.dot_dimension_numbers<[1], [0], [0], [1], [0, 0, 1, 1], [], []>} : vector<24x32xbf16>, vector<32x64xbf16>, vector<24x64xf32> -> vector<24x64xf32>
    %8 = arith.addf %3, %7 : vector<24x64xf32>
    %c0_6 = arith.constant 0 : index
    %c0_7 = arith.constant 0 : index
    %9 = vector.load %arg7[%c0_6, %c0_7] : memref<24x64xf32, #tpu.memory_space<vmem>>, vector<24x64xf32>
    tpu.vector_store %arg7[%c0_6, %c0_7], %8 {strides = array<i32>} : memref<24x64xf32, #tpu.memory_space<vmem>>, vector<24x64xf32>,
    %c0_i32_8 = arith.constant 0 : i32
    %10 = arith.cmpi eq, %arg2, %c0_i32_8 : i32
    %11 = arith.extui %10 : i1 to i32
    %c0_i32_9 = arith.constant 0 : i32
    %12 = arith.cmpi ne, %11, %c0_i32_9 : i32
    scf.if %12 {
      %c0_10 = arith.constant 0 : index
      %c0_11 = arith.constant 0 : index
      %13 = vector.load %arg7[%c0_10, %c0_11] : memref<24x64xf32, #tpu.memory_space<vmem>>, vector<24x64xf32>
      %c0_12 = arith.constant 0 : index
      %c0_13 = arith.constant 0 : index
      %14 = vector.load %arg5[%c0_12, %c0_13] : memref<1x64xf32, #tpu.memory_space<vmem>>, vector<1x64xf32>
      %15 = vector.broadcast %14 : vector<1x64xf32> to vector<24x64xf32>
      %16 = arith.addf %13, %15 : vector<24x64xf32>
      %17 = arith.truncf %16 : vector<24x64xf32> to vector<24x64xbf16>
      %c0_14 = arith.constant 0 : index
      %c0_15 = arith.constant 0 : index
      %18 = vector.load %arg6[%c0_14, %c0_15] : memref<24x64xbf16, #tpu.memory_space<vmem>>, vector<24x64xbf16>
      tpu.vector_store %arg6[%c0_14, %c0_15], %17 {strides = array<i32>} : memref<24x64xbf16, #tpu.memory_space<vmem>>, vector<24x64xbf16>,
    } else {
    }
    return
  }
  func.func @transform_0(%arg0: i32, %arg1: i32, %arg2: i32) -> (i32, i32) {
    %c0_i32 = arith.constant 0 : i32
    return %arg0, %arg2 : i32, i32
  }
  func.func @transform_1(%arg0: i32, %arg1: i32, %arg2: i32) -> (i32, i32) {
    %c0_i32 = arith.constant 0 : i32
    return %arg2, %arg1 : i32, i32
  }
  func.func @transform_2(%arg0: i32, %arg1: i32, %arg2: i32) -> (i32, i32) {
    %c0_i32 = arith.constant 0 : i32
    %c0_i32_0 = arith.constant 0 : i32
    return %c0_i32, %arg1 : i32, i32
  }
  func.func @transform_3(%arg0: i32, %arg1: i32, %arg2: i32) -> (i32, i32) {
    %c0_i32 = arith.constant 0 : i32
    return %arg0, %arg1 : i32, i32
  }
}

module attributes {stable_mosaic.version = 11 : i64} {
  func.func @_matmul_kernel(%arg0: i32, %arg1: i32, %arg2: i32, %arg3: memref<16x32xf32, #tpu.memory_space<vmem>>, %arg4: memref<32x32xbf16, #tpu.memory_space<vmem>>, %arg5: memref<1x32xf32, #tpu.memory_space<vmem>>, %arg6: memref<16x32xbf16, #tpu.memory_space<vmem>>, %arg7: memref<16x32xf32, #tpu.memory_space<vmem>>) attributes {dimension_semantics = [#tpu.dimension_semantics<parallel>, #tpu.dimension_semantics<parallel>, #tpu.dimension_semantics<arbitrary>], iteration_bounds = array<i64: 1, 1, 1>, scalar_prefetch = 0 : i64, scratch_operands = 1 : i64, tpu.core_type = #tpu.core_type<tc>, window_params = [{transform_indices = @transform_0, window_bounds = array<i64: 16, 32>}, {transform_indices = @transform_1, window_bounds = array<i64: 32, 32>}, {transform_indices = @transform_2, window_bounds = array<i64: 1, 32>}, {transform_indices = @transform_3, window_bounds = array<i64: 16, 32>}]} {
    %c0_i32 = arith.constant 0 : i32
    %0 = arith.cmpi eq, %arg2, %c0_i32 : i32
    %1 = arith.extui %0 : i1 to i32
    %c0_i32_0 = arith.constant 0 : i32
    %2 = arith.cmpi ne, %1, %c0_i32_0 : i32
    scf.if %2 {
      %cst_10 = arith.constant 0.000000e+00 : f32
      %13 = vector.broadcast %cst_10 : f32 to vector<16x32xf32>
      %c0_11 = arith.constant 0 : index
      %c0_12 = arith.constant 0 : index
      %14 = vector.load %arg7[%c0_11, %c0_12] : memref<16x32xf32, #tpu.memory_space<vmem>>, vector<16x32xf32>
      tpu.vector_store %arg7[%c0_11, %c0_12], %13 {strides = array<i32>} : memref<16x32xf32, #tpu.memory_space<vmem>>, vector<16x32xf32>,
    } else {
    }
    %c0 = arith.constant 0 : index
    %c0_1 = arith.constant 0 : index
    %3 = vector.load %arg7[%c0, %c0_1] : memref<16x32xf32, #tpu.memory_space<vmem>>, vector<16x32xf32>
    %c0_2 = arith.constant 0 : index
    %c0_3 = arith.constant 0 : index
    %4 = vector.load %arg3[%c0_2, %c0_3] : memref<16x32xf32, #tpu.memory_space<vmem>>, vector<16x32xf32>
    %5 = arith.truncf %4 : vector<16x32xf32> to vector<16x32xbf16>
    %c0_4 = arith.constant 0 : index
    %c0_5 = arith.constant 0 : index
    %6 = vector.load %arg4[%c0_4, %c0_5] : memref<32x32xbf16, #tpu.memory_space<vmem>>, vector<32x32xbf16>
    %cst = arith.constant dense<0.000000e+00> : vector<16x32xf32>
    %7 = tpu.matmul %5, %6, %cst {dimension_numbers = #tpu.dot_dimension_numbers<[1], [0], [0], [1], [0, 0, 1, 1], [], []>} : vector<16x32xbf16>, vector<32x32xbf16>, vector<16x32xf32> -> vector<16x32xf32>
    %8 = arith.addf %3, %7 : vector<16x32xf32>
    %c0_6 = arith.constant 0 : index
    %c0_7 = arith.constant 0 : index
    %9 = vector.load %arg7[%c0_6, %c0_7] : memref<16x32xf32, #tpu.memory_space<vmem>>, vector<16x32xf32>
    tpu.vector_store %arg7[%c0_6, %c0_7], %8 {strides = array<i32>} : memref<16x32xf32, #tpu.memory_space<vmem>>, vector<16x32xf32>,
    %c0_i32_8 = arith.constant 0 : i32
    %10 = arith.cmpi eq, %arg2, %c0_i32_8 : i32
    %11 = arith.extui %10 : i1 to i32
    %c0_i32_9 = arith.constant 0 : i32
    %12 = arith.cmpi ne, %11, %c0_i32_9 : i32
    scf.if %12 {
      %c0_10 = arith.constant 0 : index
      %c0_11 = arith.constant 0 : index
      %13 = vector.load %arg7[%c0_10, %c0_11] : memref<16x32xf32, #tpu.memory_space<vmem>>, vector<16x32xf32>
      %c0_12 = arith.constant 0 : index
      %c0_13 = arith.constant 0 : index
      %14 = vector.load %arg5[%c0_12, %c0_13] : memref<1x32xf32, #tpu.memory_space<vmem>>, vector<1x32xf32>
      %15 = vector.broadcast %14 : vector<1x32xf32> to vector<16x32xf32>
      %16 = arith.addf %13, %15 : vector<16x32xf32>
      %17 = arith.truncf %16 : vector<16x32xf32> to vector<16x32xbf16>
      %c0_14 = arith.constant 0 : index
      %c0_15 = arith.constant 0 : index
      %18 = vector.load %arg6[%c0_14, %c0_15] : memref<16x32xbf16, #tpu.memory_space<vmem>>, vector<16x32xbf16>
      tpu.vector_store %arg6[%c0_14, %c0_15], %17 {strides = array<i32>} : memref<16x32xbf16, #tpu.memory_space<vmem>>, vector<16x32xbf16>,
    } else {
    }
    return
  }
  func.func @transform_0(%arg0: i32, %arg1: i32, %arg2: i32) -> (i32, i32) {
    %c0_i32 = arith.constant 0 : i32
    return %arg0, %arg2 : i32, i32
  }
  func.func @transform_1(%arg0: i32, %arg1: i32, %arg2: i32) -> (i32, i32) {
    %c0_i32 = arith.constant 0 : i32
    return %arg2, %arg1 : i32, i32
  }
  func.func @transform_2(%arg0: i32, %arg1: i32, %arg2: i32) -> (i32, i32) {
    %c0_i32 = arith.constant 0 : i32
    %c0_i32_0 = arith.constant 0 : i32
    return %c0_i32, %arg1 : i32, i32
  }
  func.func @transform_3(%arg0: i32, %arg1: i32, %arg2: i32) -> (i32, i32) {
    %c0_i32 = arith.constant 0 : i32
    return %arg0, %arg1 : i32, i32
  }
}

module attributes {stable_mosaic.version = 11 : i64} {
  func.func @_matmul_kernel(%arg0: i32, %arg1: i32, %arg2: i32, %arg3: memref<16x32xf32, #tpu.memory_space<vmem>>, %arg4: memref<32x96xbf16, #tpu.memory_space<vmem>>, %arg5: memref<1x96xf32, #tpu.memory_space<vmem>>, %arg6: memref<16x96xbf16, #tpu.memory_space<vmem>>, %arg7: memref<16x96xf32, #tpu.memory_space<vmem>>) attributes {dimension_semantics = [#tpu.dimension_semantics<parallel>, #tpu.dimension_semantics<parallel>, #tpu.dimension_semantics<arbitrary>], iteration_bounds = array<i64: 1, 1, 1>, scalar_prefetch = 0 : i64, scratch_operands = 1 : i64, tpu.core_type = #tpu.core_type<tc>, window_params = [{transform_indices = @transform_0, window_bounds = array<i64: 16, 32>}, {transform_indices = @transform_1, window_bounds = array<i64: 32, 96>}, {transform_indices = @transform_2, window_bounds = array<i64: 1, 96>}, {transform_indices = @transform_3, window_bounds = array<i64: 16, 96>}]} {
    %c0_i32 = arith.constant 0 : i32
    %0 = arith.cmpi eq, %arg2, %c0_i32 : i32
    %1 = arith.extui %0 : i1 to i32
    %c0_i32_0 = arith.constant 0 : i32
    %2 = arith.cmpi ne, %1, %c0_i32_0 : i32
    scf.if %2 {
      %cst_10 = arith.constant 0.000000e+00 : f32
      %13 = vector.broadcast %cst_10 : f32 to vector<16x96xf32>
      %c0_11 = arith.constant 0 : index
      %c0_12 = arith.constant 0 : index
      %14 = vector.load %arg7[%c0_11, %c0_12] : memref<16x96xf32, #tpu.memory_space<vmem>>, vector<16x96xf32>
      tpu.vector_store %arg7[%c0_11, %c0_12], %13 {strides = array<i32>} : memref<16x96xf32, #tpu.memory_space<vmem>>, vector<16x96xf32>,
    } else {
    }
    %c0 = arith.constant 0 : index
    %c0_1 = arith.constant 0 : index
    %3 = vector.load %arg7[%c0, %c0_1] : memref<16x96xf32, #tpu.memory_space<vmem>>, vector<16x96xf32>
    %c0_2 = arith.constant 0 : index
    %c0_3 = arith.constant 0 : index
    %4 = vector.load %arg3[%c0_2, %c0_3] : memref<16x32xf32, #tpu.memory_space<vmem>>, vector<16x32xf32>
    %5 = arith.truncf %4 : vector<16x32xf32> to vector<16x32xbf16>
    %c0_4 = arith.constant 0 : index
    %c0_5 = arith.constant 0 : index
    %6 = vector.load %arg4[%c0_4, %c0_5] : memref<32x96xbf16, #tpu.memory_space<vmem>>, vector<32x96xbf16>
    %cst = arith.constant dense<0.000000e+00> : vector<16x96xf32>
    %7 = tpu.matmul %5, %6, %cst {dimension_numbers = #tpu.dot_dimension_numbers<[1], [0], [0], [1], [0, 0, 1, 1], [], []>} : vector<16x32xbf16>, vector<32x96xbf16>, vector<16x96xf32> -> vector<16x96xf32>
    %8 = arith.addf %3, %7 : vector<16x96xf32>
    %c0_6 = arith.constant 0 : index
    %c0_7 = arith.constant 0 : index
    %9 = vector.load %arg7[%c0_6, %c0_7] : memref<16x96xf32, #tpu.memory_space<vmem>>, vector<16x96xf32>
    tpu.vector_store %arg7[%c0_6, %c0_7], %8 {strides = array<i32>} : memref<16x96xf32, #tpu.memory_space<vmem>>, vector<16x96xf32>,
    %c0_i32_8 = arith.constant 0 : i32
    %10 = arith.cmpi eq, %arg2, %c0_i32_8 : i32
    %11 = arith.extui %10 : i1 to i32
    %c0_i32_9 = arith.constant 0 : i32
    %12 = arith.cmpi ne, %11, %c0_i32_9 : i32
    scf.if %12 {
      %c0_10 = arith.constant 0 : index
      %c0_11 = arith.constant 0 : index
      %13 = vector.load %arg7[%c0_10, %c0_11] : memref<16x96xf32, #tpu.memory_space<vmem>>, vector<16x96xf32>
      %c0_12 = arith.constant 0 : index
      %c0_13 = arith.constant 0 : index
      %14 = vector.load %arg5[%c0_12, %c0_13] : memref<1x96xf32, #tpu.memory_space<vmem>>, vector<1x96xf32>
      %15 = vector.broadcast %14 : vector<1x96xf32> to vector<16x96xf32>
      %16 = arith.addf %13, %15 : vector<16x96xf32>
      %17 = arith.truncf %16 : vector<16x96xf32> to vector<16x96xbf16>
      %c0_14 = arith.constant 0 : index
      %c0_15 = arith.constant 0 : index
      %18 = vector.load %arg6[%c0_14, %c0_15] : memref<16x96xbf16, #tpu.memory_space<vmem>>, vector<16x96xbf16>
      tpu.vector_store %arg6[%c0_14, %c0_15], %17 {strides = array<i32>} : memref<16x96xbf16, #tpu.memory_space<vmem>>, vector<16x96xbf16>,
    } else {
    }
    return
  }
  func.func @transform_0(%arg0: i32, %arg1: i32, %arg2: i32) -> (i32, i32) {
    %c0_i32 = arith.constant 0 : i32
    return %arg0, %arg2 : i32, i32
  }
  func.func @transform_1(%arg0: i32, %arg1: i32, %arg2: i32) -> (i32, i32) {
    %c0_i32 = arith.constant 0 : i32
    return %arg2, %arg1 : i32, i32
  }
  func.func @transform_2(%arg0: i32, %arg1: i32, %arg2: i32) -> (i32, i32) {
    %c0_i32 = arith.constant 0 : i32
    %c0_i32_0 = arith.constant 0 : i32
    return %c0_i32, %arg1 : i32, i32
  }
  func.func @transform_3(%arg0: i32, %arg1: i32, %arg2: i32) -> (i32, i32) {
    %c0_i32 = arith.constant 0 : i32
    return %arg0, %arg1 : i32, i32
  }
}

module attributes {stable_mosaic.version = 11 : i64} {
  func.func @_self_attn_ln_kernel(%arg0: i32, %arg1: i32, %arg2: memref<1x8x96xbf16, #tpu.memory_space<vmem>>, %arg3: memref<1x8x32xf32, #tpu.memory_space<vmem>>, %arg4: memref<32x32xbf16, #tpu.memory_space<vmem>>, %arg5: memref<1x32xf32, #tpu.memory_space<vmem>>, %arg6: memref<1x32xf32, #tpu.memory_space<vmem>>, %arg7: memref<1x32xf32, #tpu.memory_space<vmem>>, %arg8: memref<1x8x32xf32, #tpu.memory_space<vmem>>) attributes {dimension_semantics = [#tpu.dimension_semantics<parallel>, #tpu.dimension_semantics<parallel>], iteration_bounds = array<i64: 2, 1>, scalar_prefetch = 0 : i64, scratch_operands = 0 : i64, tpu.core_type = #tpu.core_type<tc>, window_params = [{transform_indices = @transform_0, window_bounds = array<i64: 1, 8, 96>}, {transform_indices = @transform_1, window_bounds = array<i64: 1, 8, 32>}, {pipeline_mode = #tpu.pipeline_mode<synchronous>, transform_indices = @transform_2, window_bounds = array<i64: 32, 32>}, {pipeline_mode = #tpu.pipeline_mode<synchronous>, transform_indices = @transform_3, window_bounds = array<i64: 1, 32>}, {pipeline_mode = #tpu.pipeline_mode<synchronous>, transform_indices = @transform_4, window_bounds = array<i64: 1, 32>}, {pipeline_mode = #tpu.pipeline_mode<synchronous>, transform_indices = @transform_5, window_bounds = array<i64: 1, 32>}, {transform_indices = @transform_6, window_bounds = array<i64: 1, 8, 32>}]} {
    %c8_i32 = arith.constant 8 : i32
    %0 = arith.muli %arg1, %c8_i32 : i32
    %1 = tpu.assume_multiple %0, 8 : i32
    %c0 = arith.constant 0 : index
    %2 = arith.index_cast %1 : i32 to index
    %c0_0 = arith.constant 0 : index
    %3 = vector.load %arg2[%c0, %2, %c0_0] : memref<1x8x96xbf16, #tpu.memory_space<vmem>>, vector<1x8x96xbf16>
    %4 = vector.shape_cast %3 : vector<1x8x96xbf16> to vector<8x96xbf16>
    %c0_1 = arith.constant 0 : index
    %c0_2 = arith.constant 0 : index
    %c0_3 = arith.constant 0 : index
    %5 = vector.load %arg2[%c0_1, %c0_2, %c0_3] : memref<1x8x96xbf16, #tpu.memory_space<vmem>>, vector<1x8x96xbf16>
    %6 = vector.shape_cast %5 : vector<1x8x96xbf16> to vector<8x96xbf16>
    %7 = vector.extract_strided_slice %4 {offsets = [0, 0], sizes = [8, 32], strides = [1, 1]} : vector<8x96xbf16> to vector<8x32xbf16>
    %8 = vector.extract_strided_slice %6 {offsets = [0, 32], sizes = [8, 32], strides = [1, 1]} : vector<8x96xbf16> to vector<8x32xbf16>
    %9 = vector.extract_strided_slice %6 {offsets = [0, 64], sizes = [8, 32], strides = [1, 1]} : vector<8x96xbf16> to vector<8x32xbf16>
    %c0_4 = arith.constant 0 : index
    %c0_5 = arith.constant 0 : index
    %c0_6 = arith.constant 0 : index
    %10 = vector.load %arg3[%c0_4, %c0_5, %c0_6] : memref<1x8x32xf32, #tpu.memory_space<vmem>>, vector<1x8x32xf32>
    %11 = vector.shape_cast %10 : vector<1x8x32xf32> to vector<8x32xf32>
    %12 = tpu.iota {dimensions = array<i32: 0>} : vector<8x8xi32>
    %13 = vector.broadcast %1 : i32 to vector<8x8xi32>
    %14 = arith.addi %13, %12 : vector<8x8xi32>
    %15 = tpu.iota {dimensions = array<i32: 1>} : vector<8x8xi32>
    %16 = vector.extract_strided_slice %7 {offsets = [0, 0], sizes = [8, 8], strides = [1, 1]} : vector<8x32xbf16> to vector<8x8xbf16>
    %17 = vector.extract_strided_slice %8 {offsets = [0, 0], sizes = [8, 8], strides = [1, 1]} : vector<8x32xbf16> to vector<8x8xbf16>
    %18 = vector.extract_strided_slice %9 {offsets = [0, 0], sizes = [8, 8], strides = [1, 1]} : vector<8x32xbf16> to vector<8x8xbf16>
    %cst = arith.constant dense<0.000000e+00> : vector<8x8xf32>
    %19 = tpu.matmul %16, %17, %cst {dimension_numbers = #tpu.dot_dimension_numbers<[1], [1], [0], [0], [0, 0, 1, 0], [], []>} : vector<8x8xbf16>, vector<8x8xbf16>, vector<8x8xf32> -> vector<8x8xf32>
    %cst_7 = arith.constant 0.353553385 : f32
    %20 = vector.broadcast %cst_7 : f32 to vector<8x8xf32>
    %21 = arith.mulf %19, %20 : vector<8x8xf32>
    %22 = arith.cmpi sgt, %15, %14 : vector<8x8xi32>
    %cst_8 = arith.constant -1.000000e+30 : f32
    %23 = vector.broadcast %cst_8 : f32 to vector<8x8xf32>
    %24 = arith.select %22, %23, %21 : vector<8x8xi1>, vector<8x8xf32>
    %cst_9 = arith.constant dense<0xFF800000> : vector<8xf32>
    %25 = vector.multi_reduction <maximumf>, %24, %cst_9 [1] : vector<8x8xf32> to vector<8xf32>
    %26 = vector.shape_cast %25 : vector<8xf32> to vector<8x1xf32>
    %27 = vector.broadcast %26 : vector<8x1xf32> to vector<8x8xf32>
    %28 = arith.subf %24, %27 : vector<8x8xf32>
    %29 = math.exp %28 : vector<8x8xf32>
    %cst_10 = arith.constant dense<0.000000e+00> : vector<8xf32>
    %30 = vector.multi_reduction <add>, %29, %cst_10 [1] : vector<8x8xf32> to vector<8xf32>
    %31 = vector.shape_cast %30 : vector<8xf32> to vector<8x1xf32>
    %32 = tpu.reciprocal %31 {approx = true} : vector<8x1xf32> -> vector<8x1xf32>
    %33 = vector.broadcast %32 : vector<8x1xf32> to vector<8x8xf32>
    %34 = arith.mulf %29, %33 : vector<8x8xf32>
    %35 = arith.truncf %34 : vector<8x8xf32> to vector<8x8xbf16>
    %cst_11 = arith.constant dense<0.000000e+00> : vector<8x8xf32>
    %36 = tpu.matmul %35, %18, %cst_11 {dimension_numbers = #tpu.dot_dimension_numbers<[1], [0], [0], [1], [0, 0, 1, 1], [], []>} : vector<8x8xbf16>, vector<8x8xbf16>, vector<8x8xf32> -> vector<8x8xf32>
    %37 = vector.extract_strided_slice %7 {offsets = [0, 8], sizes = [8, 8], strides = [1, 1]} : vector<8x32xbf16> to vector<8x8xbf16>
    %38 = vector.extract_strided_slice %8 {offsets = [0, 8], sizes = [8, 8], strides = [1, 1]} : vector<8x32xbf16> to vector<8x8xbf16>
    %39 = vector.extract_strided_slice %9 {offsets = [0, 8], sizes = [8, 8], strides = [1, 1]} : vector<8x32xbf16> to vector<8x8xbf16>
    %cst_12 = arith.constant dense<0.000000e+00> : vector<8x8xf32>
    %40 = tpu.matmul %37, %38, %cst_12 {dimension_numbers = #tpu.dot_dimension_numbers<[1], [1], [0], [0], [0, 0, 1, 0], [], []>} : vector<8x8xbf16>, vector<8x8xbf16>, vector<8x8xf32> -> vector<8x8xf32>
    %cst_13 = arith.constant 0.353553385 : f32
    %41 = vector.broadcast %cst_13 : f32 to vector<8x8xf32>
    %42 = arith.mulf %40, %41 : vector<8x8xf32>
    %43 = arith.cmpi sgt, %15, %14 : vector<8x8xi32>
    %cst_14 = arith.constant -1.000000e+30 : f32
    %44 = vector.broadcast %cst_14 : f32 to vector<8x8xf32>
    %45 = arith.select %43, %44, %42 : vector<8x8xi1>, vector<8x8xf32>
    %cst_15 = arith.constant dense<0xFF800000> : vector<8xf32>
    %46 = vector.multi_reduction <maximumf>, %45, %cst_15 [1] : vector<8x8xf32> to vector<8xf32>
    %47 = vector.shape_cast %46 : vector<8xf32> to vector<8x1xf32>
    %48 = vector.broadcast %47 : vector<8x1xf32> to vector<8x8xf32>
    %49 = arith.subf %45, %48 : vector<8x8xf32>
    %50 = math.exp %49 : vector<8x8xf32>
    %cst_16 = arith.constant dense<0.000000e+00> : vector<8xf32>
    %51 = vector.multi_reduction <add>, %50, %cst_16 [1] : vector<8x8xf32> to vector<8xf32>
    %52 = vector.shape_cast %51 : vector<8xf32> to vector<8x1xf32>
    %53 = tpu.reciprocal %52 {approx = true} : vector<8x1xf32> -> vector<8x1xf32>
    %54 = vector.broadcast %53 : vector<8x1xf32> to vector<8x8xf32>
    %55 = arith.mulf %50, %54 : vector<8x8xf32>
    %56 = arith.truncf %55 : vector<8x8xf32> to vector<8x8xbf16>
    %cst_17 = arith.constant dense<0.000000e+00> : vector<8x8xf32>
    %57 = tpu.matmul %56, %39, %cst_17 {dimension_numbers = #tpu.dot_dimension_numbers<[1], [0], [0], [1], [0, 0, 1, 1], [], []>} : vector<8x8xbf16>, vector<8x8xbf16>, vector<8x8xf32> -> vector<8x8xf32>
    %58 = vector.extract_strided_slice %7 {offsets = [0, 16], sizes = [8, 8], strides = [1, 1]} : vector<8x32xbf16> to vector<8x8xbf16>
    %59 = vector.extract_strided_slice %8 {offsets = [0, 16], sizes = [8, 8], strides = [1, 1]} : vector<8x32xbf16> to vector<8x8xbf16>
    %60 = vector.extract_strided_slice %9 {offsets = [0, 16], sizes = [8, 8], strides = [1, 1]} : vector<8x32xbf16> to vector<8x8xbf16>
    %cst_18 = arith.constant dense<0.000000e+00> : vector<8x8xf32>
    %61 = tpu.matmul %58, %59, %cst_18 {dimension_numbers = #tpu.dot_dimension_numbers<[1], [1], [0], [0], [0, 0, 1, 0], [], []>} : vector<8x8xbf16>, vector<8x8xbf16>, vector<8x8xf32> -> vector<8x8xf32>
    %cst_19 = arith.constant 0.353553385 : f32
    %62 = vector.broadcast %cst_19 : f32 to vector<8x8xf32>
    %63 = arith.mulf %61, %62 : vector<8x8xf32>
    %64 = arith.cmpi sgt, %15, %14 : vector<8x8xi32>
    %cst_20 = arith.constant -1.000000e+30 : f32
    %65 = vector.broadcast %cst_20 : f32 to vector<8x8xf32>
    %66 = arith.select %64, %65, %63 : vector<8x8xi1>, vector<8x8xf32>
    %cst_21 = arith.constant dense<0xFF800000> : vector<8xf32>
    %67 = vector.multi_reduction <maximumf>, %66, %cst_21 [1] : vector<8x8xf32> to vector<8xf32>
    %68 = vector.shape_cast %67 : vector<8xf32> to vector<8x1xf32>
    %69 = vector.broadcast %68 : vector<8x1xf32> to vector<8x8xf32>
    %70 = arith.subf %66, %69 : vector<8x8xf32>
    %71 = math.exp %70 : vector<8x8xf32>
    %cst_22 = arith.constant dense<0.000000e+00> : vector<8xf32>
    %72 = vector.multi_reduction <add>, %71, %cst_22 [1] : vector<8x8xf32> to vector<8xf32>
    %73 = vector.shape_cast %72 : vector<8xf32> to vector<8x1xf32>
    %74 = tpu.reciprocal %73 {approx = true} : vector<8x1xf32> -> vector<8x1xf32>
    %75 = vector.broadcast %74 : vector<8x1xf32> to vector<8x8xf32>
    %76 = arith.mulf %71, %75 : vector<8x8xf32>
    %77 = arith.truncf %76 : vector<8x8xf32> to vector<8x8xbf16>
    %cst_23 = arith.constant dense<0.000000e+00> : vector<8x8xf32>
    %78 = tpu.matmul %77, %60, %cst_23 {dimension_numbers = #tpu.dot_dimension_numbers<[1], [0], [0], [1], [0, 0, 1, 1], [], []>} : vector<8x8xbf16>, vector<8x8xbf16>, vector<8x8xf32> -> vector<8x8xf32>
    %79 = vector.extract_strided_slice %7 {offsets = [0, 24], sizes = [8, 8], strides = [1, 1]} : vector<8x32xbf16> to vector<8x8xbf16>
    %80 = vector.extract_strided_slice %8 {offsets = [0, 24], sizes = [8, 8], strides = [1, 1]} : vector<8x32xbf16> to vector<8x8xbf16>
    %81 = vector.extract_strided_slice %9 {offsets = [0, 24], sizes = [8, 8], strides = [1, 1]} : vector<8x32xbf16> to vector<8x8xbf16>
    %cst_24 = arith.constant dense<0.000000e+00> : vector<8x8xf32>
    %82 = tpu.matmul %79, %80, %cst_24 {dimension_numbers = #tpu.dot_dimension_numbers<[1], [1], [0], [0], [0, 0, 1, 0], [], []>} : vector<8x8xbf16>, vector<8x8xbf16>, vector<8x8xf32> -> vector<8x8xf32>
    %cst_25 = arith.constant 0.353553385 : f32
    %83 = vector.broadcast %cst_25 : f32 to vector<8x8xf32>
    %84 = arith.mulf %82, %83 : vector<8x8xf32>
    %85 = arith.cmpi sgt, %15, %14 : vector<8x8xi32>
    %cst_26 = arith.constant -1.000000e+30 : f32
    %86 = vector.broadcast %cst_26 : f32 to vector<8x8xf32>
    %87 = arith.select %85, %86, %84 : vector<8x8xi1>, vector<8x8xf32>
    %cst_27 = arith.constant dense<0xFF800000> : vector<8xf32>
    %88 = vector.multi_reduction <maximumf>, %87, %cst_27 [1] : vector<8x8xf32> to vector<8xf32>
    %89 = vector.shape_cast %88 : vector<8xf32> to vector<8x1xf32>
    %90 = vector.broadcast %89 : vector<8x1xf32> to vector<8x8xf32>
    %91 = arith.subf %87, %90 : vector<8x8xf32>
    %92 = math.exp %91 : vector<8x8xf32>
    %cst_28 = arith.constant dense<0.000000e+00> : vector<8xf32>
    %93 = vector.multi_reduction <add>, %92, %cst_28 [1] : vector<8x8xf32> to vector<8xf32>
    %94 = vector.shape_cast %93 : vector<8xf32> to vector<8x1xf32>
    %95 = tpu.reciprocal %94 {approx = true} : vector<8x1xf32> -> vector<8x1xf32>
    %96 = vector.broadcast %95 : vector<8x1xf32> to vector<8x8xf32>
    %97 = arith.mulf %92, %96 : vector<8x8xf32>
    %98 = arith.truncf %97 : vector<8x8xf32> to vector<8x8xbf16>
    %cst_29 = arith.constant dense<0.000000e+00> : vector<8x8xf32>
    %99 = tpu.matmul %98, %81, %cst_29 {dimension_numbers = #tpu.dot_dimension_numbers<[1], [0], [0], [1], [0, 0, 1, 1], [], []>} : vector<8x8xbf16>, vector<8x8xbf16>, vector<8x8xf32> -> vector<8x8xf32>
    %100 = tpu.concatenate %36, %57, %78, %99 in 1 : vector<8x8xf32>, vector<8x8xf32>, vector<8x8xf32>, vector<8x8xf32> -> vector<8x32xf32>
    %101 = arith.truncf %100 : vector<8x32xf32> to vector<8x32xbf16>
    %c0_30 = arith.constant 0 : index
    %c0_31 = arith.constant 0 : index
    %102 = vector.load %arg4[%c0_30, %c0_31] : memref<32x32xbf16, #tpu.memory_space<vmem>>, vector<32x32xbf16>
    %cst_32 = arith.constant dense<0.000000e+00> : vector<8x32xf32>
    %103 = tpu.matmul %101, %102, %cst_32 {dimension_numbers = #tpu.dot_dimension_numbers<[1], [0], [0], [1], [0, 0, 1, 1], [], []>} : vector<8x32xbf16>, vector<32x32xbf16>, vector<8x32xf32> -> vector<8x32xf32>
    %c0_33 = arith.constant 0 : index
    %c0_34 = arith.constant 0 : index
    %104 = vector.load %arg5[%c0_33, %c0_34] : memref<1x32xf32, #tpu.memory_space<vmem>>, vector<1x32xf32>
    %105 = vector.broadcast %104 : vector<1x32xf32> to vector<8x32xf32>
    %106 = arith.addf %103, %105 : vector<8x32xf32>
    %107 = arith.addf %106, %11 : vector<8x32xf32>
    %cst_35 = arith.constant dense<0.000000e+00> : vector<8xf32>
    %108 = vector.multi_reduction <add>, %107, %cst_35 [1] : vector<8x32xf32> to vector<8xf32>
    %109 = vector.shape_cast %108 : vector<8xf32> to vector<8x1xf32>
    %cst_36 = arith.constant 3.200000e+01 : f32
    %110 = vector.broadcast %cst_36 : f32 to vector<8x1xf32>
    %111 = arith.divf %109, %110 : vector<8x1xf32>
    %112 = vector.broadcast %111 : vector<8x1xf32> to vector<8x32xf32>
    %113 = arith.subf %107, %112 : vector<8x32xf32>
    %114 = arith.mulf %113, %113 : vector<8x32xf32>
    %cst_37 = arith.constant dense<0.000000e+00> : vector<8xf32>
    %115 = vector.multi_reduction <add>, %114, %cst_37 [1] : vector<8x32xf32> to vector<8xf32>
    %116 = vector.shape_cast %115 : vector<8xf32> to vector<8x1xf32>
    %cst_38 = arith.constant 3.200000e+01 : f32
    %117 = vector.broadcast %cst_38 : f32 to vector<8x1xf32>
    %118 = arith.divf %116, %117 : vector<8x1xf32>
    %cst_39 = arith.constant 9.99999974E-6 : f32
    %119 = vector.broadcast %cst_39 : f32 to vector<8x1xf32>
    %120 = arith.addf %118, %119 : vector<8x1xf32>
    %121 = math.rsqrt %120 : vector<8x1xf32>
    %122 = vector.broadcast %121 : vector<8x1xf32> to vector<8x32xf32>
    %123 = arith.mulf %113, %122 : vector<8x32xf32>
    %c0_40 = arith.constant 0 : index
    %c0_41 = arith.constant 0 : index
    %124 = vector.load %arg6[%c0_40, %c0_41] : memref<1x32xf32, #tpu.memory_space<vmem>>, vector<1x32xf32>
    %125 = vector.broadcast %124 : vector<1x32xf32> to vector<8x32xf32>
    %126 = arith.mulf %123, %125 : vector<8x32xf32>
    %c0_42 = arith.constant 0 : index
    %c0_43 = arith.constant 0 : index
    %127 = vector.load %arg7[%c0_42, %c0_43] : memref<1x32xf32, #tpu.memory_space<vmem>>, vector<1x32xf32>
    %128 = vector.broadcast %127 : vector<1x32xf32> to vector<8x32xf32>
    %129 = arith.addf %126, %128 : vector<8x32xf32>
    %c0_44 = arith.constant 0 : index
    %c0_45 = arith.constant 0 : index
    %c0_46 = arith.constant 0 : index
    %130 = vector.load %arg8[%c0_44, %c0_45, %c0_46] : memref<1x8x32xf32, #tpu.memory_space<vmem>>, vector<1x8x32xf32>
    %131 = vector.shape_cast %130 : vector<1x8x32xf32> to vector<8x32xf32>
    %132 = vector.shape_cast %129 : vector<8x32xf32> to vector<1x8x32xf32>
    tpu.vector_store %arg8[%c0_44, %c0_45, %c0_46], %132 {strides = array<i32>} : memref<1x8x32xf32, #tpu.memory_space<vmem>>, vector<1x8x32xf32>,
    return
  }
  func.func @transform_0(%arg0: i32, %arg1: i32) -> (i32, i32, i32) {
    %c0_i32 = arith.constant 0 : i32
    %c0_i32_0 = arith.constant 0 : i32
    %c0_i32_1 = arith.constant 0 : i32
    return %arg0, %c0_i32, %c0_i32_0 : i32, i32, i32
  }
  func.func @transform_1(%arg0: i32, %arg1: i32) -> (i32, i32, i32) {
    %c0_i32 = arith.constant 0 : i32
    %c0_i32_0 = arith.constant 0 : i32
    return %arg0, %arg1, %c0_i32 : i32, i32, i32
  }
  func.func @transform_2(%arg0: i32, %arg1: i32) -> (i32, i32) {
    %c0_i32 = arith.constant 0 : i32
    %c0_i32_0 = arith.constant 0 : i32
    %c0_i32_1 = arith.constant 0 : i32
    return %c0_i32, %c0_i32_0 : i32, i32
  }
  func.func @transform_3(%arg0: i32, %arg1: i32) -> (i32, i32) {
    %c0_i32 = arith.constant 0 : i32
    %c0_i32_0 = arith.constant 0 : i32
    %c0_i32_1 = arith.constant 0 : i32
    return %c0_i32, %c0_i32_0 : i32, i32
  }
  func.func @transform_4(%arg0: i32, %arg1: i32) -> (i32, i32) {
    %c0_i32 = arith.constant 0 : i32
    %c0_i32_0 = arith.constant 0 : i32
    %c0_i32_1 = arith.constant 0 : i32
    return %c0_i32, %c0_i32_0 : i32, i32
  }
  func.func @transform_5(%arg0: i32, %arg1: i32) -> (i32, i32) {
    %c0_i32 = arith.constant 0 : i32
    %c0_i32_0 = arith.constant 0 : i32
    %c0_i32_1 = arith.constant 0 : i32
    return %c0_i32, %c0_i32_0 : i32, i32
  }
  func.func @transform_6(%arg0: i32, %arg1: i32) -> (i32, i32, i32) {
    %c0_i32 = arith.constant 0 : i32
    %c0_i32_0 = arith.constant 0 : i32
    return %arg0, %arg1, %c0_i32 : i32, i32, i32
  }
}

module attributes {stable_mosaic.version = 11 : i64} {
  func.func @_cross_attn_ln_kernel(%arg0: i32, %arg1: i32, %arg2: memref<1x8x32xbf16, #tpu.memory_space<vmem>>, %arg3: memref<1x12x64xbf16, #tpu.memory_space<vmem>>, %arg4: memref<1x8x32xf32, #tpu.memory_space<vmem>>, %arg5: memref<32x32xbf16, #tpu.memory_space<vmem>>, %arg6: memref<1x32xf32, #tpu.memory_space<vmem>>, %arg7: memref<1x32xf32, #tpu.memory_space<vmem>>, %arg8: memref<1x32xf32, #tpu.memory_space<vmem>>, %arg9: memref<1x8x32xf32, #tpu.memory_space<vmem>>) attributes {dimension_semantics = [#tpu.dimension_semantics<parallel>, #tpu.dimension_semantics<parallel>], iteration_bounds = array<i64: 2, 1>, scalar_prefetch = 0 : i64, scratch_operands = 0 : i64, tpu.core_type = #tpu.core_type<tc>, window_params = [{transform_indices = @transform_0, window_bounds = array<i64: 1, 8, 32>}, {transform_indices = @transform_1, window_bounds = array<i64: 1, 12, 64>}, {transform_indices = @transform_2, window_bounds = array<i64: 1, 8, 32>}, {pipeline_mode = #tpu.pipeline_mode<synchronous>, transform_indices = @transform_3, window_bounds = array<i64: 32, 32>}, {pipeline_mode = #tpu.pipeline_mode<synchronous>, transform_indices = @transform_4, window_bounds = array<i64: 1, 32>}, {pipeline_mode = #tpu.pipeline_mode<synchronous>, transform_indices = @transform_5, window_bounds = array<i64: 1, 32>}, {pipeline_mode = #tpu.pipeline_mode<synchronous>, transform_indices = @transform_6, window_bounds = array<i64: 1, 32>}, {transform_indices = @transform_7, window_bounds = array<i64: 1, 8, 32>}]} {
    %c0 = arith.constant 0 : index
    %c0_0 = arith.constant 0 : index
    %c0_1 = arith.constant 0 : index
    %0 = vector.load %arg3[%c0, %c0_0, %c0_1] : memref<1x12x64xbf16, #tpu.memory_space<vmem>>, vector<1x12x64xbf16>
    %1 = vector.shape_cast %0 : vector<1x12x64xbf16> to vector<12x64xbf16>
    %c0_2 = arith.constant 0 : index
    %c0_3 = arith.constant 0 : index
    %c0_4 = arith.constant 0 : index
    %2 = vector.load %arg2[%c0_2, %c0_3, %c0_4] : memref<1x8x32xbf16, #tpu.memory_space<vmem>>, vector<1x8x32xbf16>
    %3 = vector.shape_cast %2 : vector<1x8x32xbf16> to vector<8x32xbf16>
    %4 = vector.extract_strided_slice %1 {offsets = [0, 0], sizes = [12, 32], strides = [1, 1]} : vector<12x64xbf16> to vector<12x32xbf16>
    %5 = vector.extract_strided_slice %1 {offsets = [0, 32], sizes = [12, 32], strides = [1, 1]} : vector<12x64xbf16> to vector<12x32xbf16>
    %c0_5 = arith.constant 0 : index
    %c0_6 = arith.constant 0 : index
    %c0_7 = arith.constant 0 : index
    %6 = vector.load %arg4[%c0_5, %c0_6, %c0_7] : memref<1x8x32xf32, #tpu.memory_space<vmem>>, vector<1x8x32xf32>
    %7 = vector.shape_cast %6 : vector<1x8x32xf32> to vector<8x32xf32>
    %8 = vector.extract_strided_slice %3 {offsets = [0, 0], sizes = [8, 8], strides = [1, 1]} : vector<8x32xbf16> to vector<8x8xbf16>
    %9 = vector.extract_strided_slice %4 {offsets = [0, 0], sizes = [12, 8], strides = [1, 1]} : vector<12x32xbf16> to vector<12x8xbf16>
    %10 = vector.extract_strided_slice %5 {offsets = [0, 0], sizes = [12, 8], strides = [1, 1]} : vector<12x32xbf16> to vector<12x8xbf16>
    %cst = arith.constant dense<0.000000e+00> : vector<8x12xf32>
    %11 = tpu.matmul %8, %9, %cst {dimension_numbers = #tpu.dot_dimension_numbers<[1], [1], [0], [0], [0, 0, 1, 0], [], []>} : vector<8x8xbf16>, vector<12x8xbf16>, vector<8x12xf32> -> vector<8x12xf32>
    %cst_8 = arith.constant 0.353553385 : f32
    %12 = vector.broadcast %cst_8 : f32 to vector<8x12xf32>
    %13 = arith.mulf %11, %12 : vector<8x12xf32>
    %cst_9 = arith.constant dense<0xFF800000> : vector<8xf32>
    %14 = vector.multi_reduction <maximumf>, %13, %cst_9 [1] : vector<8x12xf32> to vector<8xf32>
    %15 = vector.shape_cast %14 : vector<8xf32> to vector<8x1xf32>
    %16 = vector.broadcast %15 : vector<8x1xf32> to vector<8x12xf32>
    %17 = arith.subf %13, %16 : vector<8x12xf32>
    %18 = math.exp %17 : vector<8x12xf32>
    %cst_10 = arith.constant dense<0.000000e+00> : vector<8xf32>
    %19 = vector.multi_reduction <add>, %18, %cst_10 [1] : vector<8x12xf32> to vector<8xf32>
    %20 = vector.shape_cast %19 : vector<8xf32> to vector<8x1xf32>
    %21 = tpu.reciprocal %20 {approx = true} : vector<8x1xf32> -> vector<8x1xf32>
    %22 = vector.broadcast %21 : vector<8x1xf32> to vector<8x12xf32>
    %23 = arith.mulf %18, %22 : vector<8x12xf32>
    %24 = arith.truncf %23 : vector<8x12xf32> to vector<8x12xbf16>
    %cst_11 = arith.constant dense<0.000000e+00> : vector<8x8xf32>
    %25 = tpu.matmul %24, %10, %cst_11 {dimension_numbers = #tpu.dot_dimension_numbers<[1], [0], [0], [1], [0, 0, 1, 1], [], []>} : vector<8x12xbf16>, vector<12x8xbf16>, vector<8x8xf32> -> vector<8x8xf32>
    %26 = vector.extract_strided_slice %3 {offsets = [0, 8], sizes = [8, 8], strides = [1, 1]} : vector<8x32xbf16> to vector<8x8xbf16>
    %27 = vector.extract_strided_slice %4 {offsets = [0, 8], sizes = [12, 8], strides = [1, 1]} : vector<12x32xbf16> to vector<12x8xbf16>
    %28 = vector.extract_strided_slice %5 {offsets = [0, 8], sizes = [12, 8], strides = [1, 1]} : vector<12x32xbf16> to vector<12x8xbf16>
    %cst_12 = arith.constant dense<0.000000e+00> : vector<8x12xf32>
    %29 = tpu.matmul %26, %27, %cst_12 {dimension_numbers = #tpu.dot_dimension_numbers<[1], [1], [0], [0], [0, 0, 1, 0], [], []>} : vector<8x8xbf16>, vector<12x8xbf16>, vector<8x12xf32> -> vector<8x12xf32>
    %cst_13 = arith.constant 0.353553385 : f32
    %30 = vector.broadcast %cst_13 : f32 to vector<8x12xf32>
    %31 = arith.mulf %29, %30 : vector<8x12xf32>
    %cst_14 = arith.constant dense<0xFF800000> : vector<8xf32>
    %32 = vector.multi_reduction <maximumf>, %31, %cst_14 [1] : vector<8x12xf32> to vector<8xf32>
    %33 = vector.shape_cast %32 : vector<8xf32> to vector<8x1xf32>
    %34 = vector.broadcast %33 : vector<8x1xf32> to vector<8x12xf32>
    %35 = arith.subf %31, %34 : vector<8x12xf32>
    %36 = math.exp %35 : vector<8x12xf32>
    %cst_15 = arith.constant dense<0.000000e+00> : vector<8xf32>
    %37 = vector.multi_reduction <add>, %36, %cst_15 [1] : vector<8x12xf32> to vector<8xf32>
    %38 = vector.shape_cast %37 : vector<8xf32> to vector<8x1xf32>
    %39 = tpu.reciprocal %38 {approx = true} : vector<8x1xf32> -> vector<8x1xf32>
    %40 = vector.broadcast %39 : vector<8x1xf32> to vector<8x12xf32>
    %41 = arith.mulf %36, %40 : vector<8x12xf32>
    %42 = arith.truncf %41 : vector<8x12xf32> to vector<8x12xbf16>
    %cst_16 = arith.constant dense<0.000000e+00> : vector<8x8xf32>
    %43 = tpu.matmul %42, %28, %cst_16 {dimension_numbers = #tpu.dot_dimension_numbers<[1], [0], [0], [1], [0, 0, 1, 1], [], []>} : vector<8x12xbf16>, vector<12x8xbf16>, vector<8x8xf32> -> vector<8x8xf32>
    %44 = vector.extract_strided_slice %3 {offsets = [0, 16], sizes = [8, 8], strides = [1, 1]} : vector<8x32xbf16> to vector<8x8xbf16>
    %45 = vector.extract_strided_slice %4 {offsets = [0, 16], sizes = [12, 8], strides = [1, 1]} : vector<12x32xbf16> to vector<12x8xbf16>
    %46 = vector.extract_strided_slice %5 {offsets = [0, 16], sizes = [12, 8], strides = [1, 1]} : vector<12x32xbf16> to vector<12x8xbf16>
    %cst_17 = arith.constant dense<0.000000e+00> : vector<8x12xf32>
    %47 = tpu.matmul %44, %45, %cst_17 {dimension_numbers = #tpu.dot_dimension_numbers<[1], [1], [0], [0], [0, 0, 1, 0], [], []>} : vector<8x8xbf16>, vector<12x8xbf16>, vector<8x12xf32> -> vector<8x12xf32>
    %cst_18 = arith.constant 0.353553385 : f32
    %48 = vector.broadcast %cst_18 : f32 to vector<8x12xf32>
    %49 = arith.mulf %47, %48 : vector<8x12xf32>
    %cst_19 = arith.constant dense<0xFF800000> : vector<8xf32>
    %50 = vector.multi_reduction <maximumf>, %49, %cst_19 [1] : vector<8x12xf32> to vector<8xf32>
    %51 = vector.shape_cast %50 : vector<8xf32> to vector<8x1xf32>
    %52 = vector.broadcast %51 : vector<8x1xf32> to vector<8x12xf32>
    %53 = arith.subf %49, %52 : vector<8x12xf32>
    %54 = math.exp %53 : vector<8x12xf32>
    %cst_20 = arith.constant dense<0.000000e+00> : vector<8xf32>
    %55 = vector.multi_reduction <add>, %54, %cst_20 [1] : vector<8x12xf32> to vector<8xf32>
    %56 = vector.shape_cast %55 : vector<8xf32> to vector<8x1xf32>
    %57 = tpu.reciprocal %56 {approx = true} : vector<8x1xf32> -> vector<8x1xf32>
    %58 = vector.broadcast %57 : vector<8x1xf32> to vector<8x12xf32>
    %59 = arith.mulf %54, %58 : vector<8x12xf32>
    %60 = arith.truncf %59 : vector<8x12xf32> to vector<8x12xbf16>
    %cst_21 = arith.constant dense<0.000000e+00> : vector<8x8xf32>
    %61 = tpu.matmul %60, %46, %cst_21 {dimension_numbers = #tpu.dot_dimension_numbers<[1], [0], [0], [1], [0, 0, 1, 1], [], []>} : vector<8x12xbf16>, vector<12x8xbf16>, vector<8x8xf32> -> vector<8x8xf32>
    %62 = vector.extract_strided_slice %3 {offsets = [0, 24], sizes = [8, 8], strides = [1, 1]} : vector<8x32xbf16> to vector<8x8xbf16>
    %63 = vector.extract_strided_slice %4 {offsets = [0, 24], sizes = [12, 8], strides = [1, 1]} : vector<12x32xbf16> to vector<12x8xbf16>
    %64 = vector.extract_strided_slice %5 {offsets = [0, 24], sizes = [12, 8], strides = [1, 1]} : vector<12x32xbf16> to vector<12x8xbf16>
    %cst_22 = arith.constant dense<0.000000e+00> : vector<8x12xf32>
    %65 = tpu.matmul %62, %63, %cst_22 {dimension_numbers = #tpu.dot_dimension_numbers<[1], [1], [0], [0], [0, 0, 1, 0], [], []>} : vector<8x8xbf16>, vector<12x8xbf16>, vector<8x12xf32> -> vector<8x12xf32>
    %cst_23 = arith.constant 0.353553385 : f32
    %66 = vector.broadcast %cst_23 : f32 to vector<8x12xf32>
    %67 = arith.mulf %65, %66 : vector<8x12xf32>
    %cst_24 = arith.constant dense<0xFF800000> : vector<8xf32>
    %68 = vector.multi_reduction <maximumf>, %67, %cst_24 [1] : vector<8x12xf32> to vector<8xf32>
    %69 = vector.shape_cast %68 : vector<8xf32> to vector<8x1xf32>
    %70 = vector.broadcast %69 : vector<8x1xf32> to vector<8x12xf32>
    %71 = arith.subf %67, %70 : vector<8x12xf32>
    %72 = math.exp %71 : vector<8x12xf32>
    %cst_25 = arith.constant dense<0.000000e+00> : vector<8xf32>
    %73 = vector.multi_reduction <add>, %72, %cst_25 [1] : vector<8x12xf32> to vector<8xf32>
    %74 = vector.shape_cast %73 : vector<8xf32> to vector<8x1xf32>
    %75 = tpu.reciprocal %74 {approx = true} : vector<8x1xf32> -> vector<8x1xf32>
    %76 = vector.broadcast %75 : vector<8x1xf32> to vector<8x12xf32>
    %77 = arith.mulf %72, %76 : vector<8x12xf32>
    %78 = arith.truncf %77 : vector<8x12xf32> to vector<8x12xbf16>
    %cst_26 = arith.constant dense<0.000000e+00> : vector<8x8xf32>
    %79 = tpu.matmul %78, %64, %cst_26 {dimension_numbers = #tpu.dot_dimension_numbers<[1], [0], [0], [1], [0, 0, 1, 1], [], []>} : vector<8x12xbf16>, vector<12x8xbf16>, vector<8x8xf32> -> vector<8x8xf32>
    %80 = tpu.concatenate %25, %43, %61, %79 in 1 : vector<8x8xf32>, vector<8x8xf32>, vector<8x8xf32>, vector<8x8xf32> -> vector<8x32xf32>
    %81 = arith.truncf %80 : vector<8x32xf32> to vector<8x32xbf16>
    %c0_27 = arith.constant 0 : index
    %c0_28 = arith.constant 0 : index
    %82 = vector.load %arg5[%c0_27, %c0_28] : memref<32x32xbf16, #tpu.memory_space<vmem>>, vector<32x32xbf16>
    %cst_29 = arith.constant dense<0.000000e+00> : vector<8x32xf32>
    %83 = tpu.matmul %81, %82, %cst_29 {dimension_numbers = #tpu.dot_dimension_numbers<[1], [0], [0], [1], [0, 0, 1, 1], [], []>} : vector<8x32xbf16>, vector<32x32xbf16>, vector<8x32xf32> -> vector<8x32xf32>
    %c0_30 = arith.constant 0 : index
    %c0_31 = arith.constant 0 : index
    %84 = vector.load %arg6[%c0_30, %c0_31] : memref<1x32xf32, #tpu.memory_space<vmem>>, vector<1x32xf32>
    %85 = vector.broadcast %84 : vector<1x32xf32> to vector<8x32xf32>
    %86 = arith.addf %83, %85 : vector<8x32xf32>
    %87 = arith.addf %86, %7 : vector<8x32xf32>
    %cst_32 = arith.constant dense<0.000000e+00> : vector<8xf32>
    %88 = vector.multi_reduction <add>, %87, %cst_32 [1] : vector<8x32xf32> to vector<8xf32>
    %89 = vector.shape_cast %88 : vector<8xf32> to vector<8x1xf32>
    %cst_33 = arith.constant 3.200000e+01 : f32
    %90 = vector.broadcast %cst_33 : f32 to vector<8x1xf32>
    %91 = arith.divf %89, %90 : vector<8x1xf32>
    %92 = vector.broadcast %91 : vector<8x1xf32> to vector<8x32xf32>
    %93 = arith.subf %87, %92 : vector<8x32xf32>
    %94 = arith.mulf %93, %93 : vector<8x32xf32>
    %cst_34 = arith.constant dense<0.000000e+00> : vector<8xf32>
    %95 = vector.multi_reduction <add>, %94, %cst_34 [1] : vector<8x32xf32> to vector<8xf32>
    %96 = vector.shape_cast %95 : vector<8xf32> to vector<8x1xf32>
    %cst_35 = arith.constant 3.200000e+01 : f32
    %97 = vector.broadcast %cst_35 : f32 to vector<8x1xf32>
    %98 = arith.divf %96, %97 : vector<8x1xf32>
    %cst_36 = arith.constant 9.99999974E-6 : f32
    %99 = vector.broadcast %cst_36 : f32 to vector<8x1xf32>
    %100 = arith.addf %98, %99 : vector<8x1xf32>
    %101 = math.rsqrt %100 : vector<8x1xf32>
    %102 = vector.broadcast %101 : vector<8x1xf32> to vector<8x32xf32>
    %103 = arith.mulf %93, %102 : vector<8x32xf32>
    %c0_37 = arith.constant 0 : index
    %c0_38 = arith.constant 0 : index
    %104 = vector.load %arg7[%c0_37, %c0_38] : memref<1x32xf32, #tpu.memory_space<vmem>>, vector<1x32xf32>
    %105 = vector.broadcast %104 : vector<1x32xf32> to vector<8x32xf32>
    %106 = arith.mulf %103, %105 : vector<8x32xf32>
    %c0_39 = arith.constant 0 : index
    %c0_40 = arith.constant 0 : index
    %107 = vector.load %arg8[%c0_39, %c0_40] : memref<1x32xf32, #tpu.memory_space<vmem>>, vector<1x32xf32>
    %108 = vector.broadcast %107 : vector<1x32xf32> to vector<8x32xf32>
    %109 = arith.addf %106, %108 : vector<8x32xf32>
    %c0_41 = arith.constant 0 : index
    %c0_42 = arith.constant 0 : index
    %c0_43 = arith.constant 0 : index
    %110 = vector.load %arg9[%c0_41, %c0_42, %c0_43] : memref<1x8x32xf32, #tpu.memory_space<vmem>>, vector<1x8x32xf32>
    %111 = vector.shape_cast %110 : vector<1x8x32xf32> to vector<8x32xf32>
    %112 = vector.shape_cast %109 : vector<8x32xf32> to vector<1x8x32xf32>
    tpu.vector_store %arg9[%c0_41, %c0_42, %c0_43], %112 {strides = array<i32>} : memref<1x8x32xf32, #tpu.memory_space<vmem>>, vector<1x8x32xf32>,
    return
  }
  func.func @transform_0(%arg0: i32, %arg1: i32) -> (i32, i32, i32) {
    %c0_i32 = arith.constant 0 : i32
    %c0_i32_0 = arith.constant 0 : i32
    return %arg0, %arg1, %c0_i32 : i32, i32, i32
  }
  func.func @transform_1(%arg0: i32, %arg1: i32) -> (i32, i32, i32) {
    %c0_i32 = arith.constant 0 : i32
    %c0_i32_0 = arith.constant 0 : i32
    %c0_i32_1 = arith.constant 0 : i32
    return %arg0, %c0_i32, %c0_i32_0 : i32, i32, i32
  }
  func.func @transform_2(%arg0: i32, %arg1: i32) -> (i32, i32, i32) {
    %c0_i32 = arith.constant 0 : i32
    %c0_i32_0 = arith.constant 0 : i32
    return %arg0, %arg1, %c0_i32 : i32, i32, i32
  }
  func.func @transform_3(%arg0: i32, %arg1: i32) -> (i32, i32) {
    %c0_i32 = arith.constant 0 : i32
    %c0_i32_0 = arith.constant 0 : i32
    %c0_i32_1 = arith.constant 0 : i32
    return %c0_i32, %c0_i32_0 : i32, i32
  }
  func.func @transform_4(%arg0: i32, %arg1: i32) -> (i32, i32) {
    %c0_i32 = arith.constant 0 : i32
    %c0_i32_0 = arith.constant 0 : i32
    %c0_i32_1 = arith.constant 0 : i32
    return %c0_i32, %c0_i32_0 : i32, i32
  }
  func.func @transform_5(%arg0: i32, %arg1: i32) -> (i32, i32) {
    %c0_i32 = arith.constant 0 : i32
    %c0_i32_0 = arith.constant 0 : i32
    %c0_i32_1 = arith.constant 0 : i32
    return %c0_i32, %c0_i32_0 : i32, i32
  }
  func.func @transform_6(%arg0: i32, %arg1: i32) -> (i32, i32) {
    %c0_i32 = arith.constant 0 : i32
    %c0_i32_0 = arith.constant 0 : i32
    %c0_i32_1 = arith.constant 0 : i32
    return %c0_i32, %c0_i32_0 : i32, i32
  }
  func.func @transform_7(%arg0: i32, %arg1: i32) -> (i32, i32, i32) {
    %c0_i32 = arith.constant 0 : i32
    %c0_i32_0 = arith.constant 0 : i32
    return %arg0, %arg1, %c0_i32 : i32, i32, i32
  }
}

module attributes {stable_mosaic.version = 11 : i64} {
  func.func @_ffn_ln_kernel(%arg0: i32, %arg1: memref<16x32xf32, #tpu.memory_space<vmem>>, %arg2: memref<32x64xbf16, #tpu.memory_space<vmem>>, %arg3: memref<1x64xf32, #tpu.memory_space<vmem>>, %arg4: memref<64x32xbf16, #tpu.memory_space<vmem>>, %arg5: memref<1x32xf32, #tpu.memory_space<vmem>>, %arg6: memref<1x32xf32, #tpu.memory_space<vmem>>, %arg7: memref<1x32xf32, #tpu.memory_space<vmem>>, %arg8: memref<16x32xf32, #tpu.memory_space<vmem>>) attributes {dimension_semantics = [#tpu.dimension_semantics<parallel>], iteration_bounds = array<i64: 1>, scalar_prefetch = 0 : i64, scratch_operands = 0 : i64, tpu.core_type = #tpu.core_type<tc>, window_params = [{transform_indices = @transform_0, window_bounds = array<i64: 16, 32>}, {pipeline_mode = #tpu.pipeline_mode<synchronous>, transform_indices = @transform_1, window_bounds = array<i64: 32, 64>}, {pipeline_mode = #tpu.pipeline_mode<synchronous>, transform_indices = @transform_2, window_bounds = array<i64: 1, 64>}, {pipeline_mode = #tpu.pipeline_mode<synchronous>, transform_indices = @transform_3, window_bounds = array<i64: 64, 32>}, {pipeline_mode = #tpu.pipeline_mode<synchronous>, transform_indices = @transform_4, window_bounds = array<i64: 1, 32>}, {pipeline_mode = #tpu.pipeline_mode<synchronous>, transform_indices = @transform_5, window_bounds = array<i64: 1, 32>}, {pipeline_mode = #tpu.pipeline_mode<synchronous>, transform_indices = @transform_6, window_bounds = array<i64: 1, 32>}, {transform_indices = @transform_7, window_bounds = array<i64: 16, 32>}]} {
    %c0 = arith.constant 0 : index
    %c0_0 = arith.constant 0 : index
    %0 = vector.load %arg1[%c0, %c0_0] : memref<16x32xf32, #tpu.memory_space<vmem>>, vector<16x32xf32>
    %1 = arith.truncf %0 : vector<16x32xf32> to vector<16x32xbf16>
    %cst = arith.constant 0.000000e+00 : f32
    %2 = vector.broadcast %cst : f32 to vector<16x32xf32>
    %c0_1 = arith.constant 0 : index
    %c0_2 = arith.constant 0 : index
    %3 = vector.load %arg2[%c0_1, %c0_2] : memref<32x64xbf16, #tpu.memory_space<vmem>>, vector<32x64xbf16>
    %cst_3 = arith.constant dense<0.000000e+00> : vector<16x64xf32>
    %4 = tpu.matmul %1, %3, %cst_3 {dimension_numbers = #tpu.dot_dimension_numbers<[1], [0], [0], [1], [0, 0, 1, 1], [], []>} : vector<16x32xbf16>, vector<32x64xbf16>, vector<16x64xf32> -> vector<16x64xf32>
    %c0_4 = arith.constant 0 : index
    %c0_5 = arith.constant 0 : index
    %5 = vector.load %arg3[%c0_4, %c0_5] : memref<1x64xf32, #tpu.memory_space<vmem>>, vector<1x64xf32>
    %6 = vector.broadcast %5 : vector<1x64xf32> to vector<16x64xf32>
    %7 = arith.addf %4, %6 : vector<16x64xf32>
    %cst_6 = arith.constant 0.000000e+00 : f32
    %8 = vector.broadcast %cst_6 : f32 to vector<16x64xf32>
    %9 = arith.maximumf %7, %8 : vector<16x64xf32>
    %10 = arith.truncf %9 : vector<16x64xf32> to vector<16x64xbf16>
    %c0_7 = arith.constant 0 : index
    %c0_8 = arith.constant 0 : index
    %11 = vector.load %arg4[%c0_7, %c0_8] : memref<64x32xbf16, #tpu.memory_space<vmem>>, vector<64x32xbf16>
    %cst_9 = arith.constant dense<0.000000e+00> : vector<16x32xf32>
    %12 = tpu.matmul %10, %11, %cst_9 {dimension_numbers = #tpu.dot_dimension_numbers<[1], [0], [0], [1], [0, 0, 1, 1], [], []>} : vector<16x64xbf16>, vector<64x32xbf16>, vector<16x32xf32> -> vector<16x32xf32>
    %13 = arith.addf %2, %12 : vector<16x32xf32>
    %c0_10 = arith.constant 0 : index
    %c0_11 = arith.constant 0 : index
    %14 = vector.load %arg5[%c0_10, %c0_11] : memref<1x32xf32, #tpu.memory_space<vmem>>, vector<1x32xf32>
    %15 = vector.broadcast %14 : vector<1x32xf32> to vector<16x32xf32>
    %16 = arith.addf %13, %15 : vector<16x32xf32>
    %17 = arith.addf %16, %0 : vector<16x32xf32>
    %cst_12 = arith.constant dense<0.000000e+00> : vector<16xf32>
    %18 = vector.multi_reduction <add>, %17, %cst_12 [1] : vector<16x32xf32> to vector<16xf32>
    %19 = vector.shape_cast %18 : vector<16xf32> to vector<16x1xf32>
    %cst_13 = arith.constant 3.200000e+01 : f32
    %20 = vector.broadcast %cst_13 : f32 to vector<16x1xf32>
    %21 = arith.divf %19, %20 : vector<16x1xf32>
    %22 = vector.broadcast %21 : vector<16x1xf32> to vector<16x32xf32>
    %23 = arith.subf %17, %22 : vector<16x32xf32>
    %24 = arith.mulf %23, %23 : vector<16x32xf32>
    %cst_14 = arith.constant dense<0.000000e+00> : vector<16xf32>
    %25 = vector.multi_reduction <add>, %24, %cst_14 [1] : vector<16x32xf32> to vector<16xf32>
    %26 = vector.shape_cast %25 : vector<16xf32> to vector<16x1xf32>
    %cst_15 = arith.constant 3.200000e+01 : f32
    %27 = vector.broadcast %cst_15 : f32 to vector<16x1xf32>
    %28 = arith.divf %26, %27 : vector<16x1xf32>
    %cst_16 = arith.constant 9.99999974E-6 : f32
    %29 = vector.broadcast %cst_16 : f32 to vector<16x1xf32>
    %30 = arith.addf %28, %29 : vector<16x1xf32>
    %31 = math.rsqrt %30 : vector<16x1xf32>
    %32 = vector.broadcast %31 : vector<16x1xf32> to vector<16x32xf32>
    %33 = arith.mulf %23, %32 : vector<16x32xf32>
    %c0_17 = arith.constant 0 : index
    %c0_18 = arith.constant 0 : index
    %34 = vector.load %arg6[%c0_17, %c0_18] : memref<1x32xf32, #tpu.memory_space<vmem>>, vector<1x32xf32>
    %35 = vector.broadcast %34 : vector<1x32xf32> to vector<16x32xf32>
    %36 = arith.mulf %33, %35 : vector<16x32xf32>
    %c0_19 = arith.constant 0 : index
    %c0_20 = arith.constant 0 : index
    %37 = vector.load %arg7[%c0_19, %c0_20] : memref<1x32xf32, #tpu.memory_space<vmem>>, vector<1x32xf32>
    %38 = vector.broadcast %37 : vector<1x32xf32> to vector<16x32xf32>
    %39 = arith.addf %36, %38 : vector<16x32xf32>
    %c0_21 = arith.constant 0 : index
    %c0_22 = arith.constant 0 : index
    %40 = vector.load %arg8[%c0_21, %c0_22] : memref<16x32xf32, #tpu.memory_space<vmem>>, vector<16x32xf32>
    tpu.vector_store %arg8[%c0_21, %c0_22], %39 {strides = array<i32>} : memref<16x32xf32, #tpu.memory_space<vmem>>, vector<16x32xf32>,
    return
  }
  func.func @transform_0(%arg0: i32) -> (i32, i32) {
    %c0_i32 = arith.constant 0 : i32
    %c0_i32_0 = arith.constant 0 : i32
    return %arg0, %c0_i32 : i32, i32
  }
  func.func @transform_1(%arg0: i32) -> (i32, i32) {
    %c0_i32 = arith.constant 0 : i32
    %c0_i32_0 = arith.constant 0 : i32
    %c0_i32_1 = arith.constant 0 : i32
    return %c0_i32, %c0_i32_0 : i32, i32
  }
  func.func @transform_2(%arg0: i32) -> (i32, i32) {
    %c0_i32 = arith.constant 0 : i32
    %c0_i32_0 = arith.constant 0 : i32
    %c0_i32_1 = arith.constant 0 : i32
    return %c0_i32, %c0_i32_0 : i32, i32
  }
  func.func @transform_3(%arg0: i32) -> (i32, i32) {
    %c0_i32 = arith.constant 0 : i32
    %c0_i32_0 = arith.constant 0 : i32
    %c0_i32_1 = arith.constant 0 : i32
    return %c0_i32, %c0_i32_0 : i32, i32
  }
  func.func @transform_4(%arg0: i32) -> (i32, i32) {
    %c0_i32 = arith.constant 0 : i32
    %c0_i32_0 = arith.constant 0 : i32
    %c0_i32_1 = arith.constant 0 : i32
    return %c0_i32, %c0_i32_0 : i32, i32
  }
  func.func @transform_5(%arg0: i32) -> (i32, i32) {
    %c0_i32 = arith.constant 0 : i32
    %c0_i32_0 = arith.constant 0 : i32
    %c0_i32_1 = arith.constant 0 : i32
    return %c0_i32, %c0_i32_0 : i32, i32
  }
  func.func @transform_6(%arg0: i32) -> (i32, i32) {
    %c0_i32 = arith.constant 0 : i32
    %c0_i32_0 = arith.constant 0 : i32
    %c0_i32_1 = arith.constant 0 : i32
    return %c0_i32, %c0_i32_0 : i32, i32
  }
  func.func @transform_7(%arg0: i32) -> (i32, i32) {
    %c0_i32 = arith.constant 0 : i32
    %c0_i32_0 = arith.constant 0 : i32
    return %arg0, %c0_i32 : i32, i32
  }
}

module attributes {stable_mosaic.version = 11 : i64} {
  func.func @_ln_proj_kernel(%arg0: i32, %arg1: memref<16x32xf32, #tpu.memory_space<vmem>>, %arg2: memref<1x32xf32, #tpu.memory_space<vmem>>, %arg3: memref<1x32xf32, #tpu.memory_space<vmem>>, %arg4: memref<32x128xbf16, #tpu.memory_space<vmem>>, %arg5: memref<1x128xf32, #tpu.memory_space<vmem>>, %arg6: memref<16x128xf32, #tpu.memory_space<vmem>>) attributes {dimension_semantics = [#tpu.dimension_semantics<parallel>], iteration_bounds = array<i64: 1>, scalar_prefetch = 0 : i64, scratch_operands = 0 : i64, tpu.core_type = #tpu.core_type<tc>, window_params = [{transform_indices = @transform_0, window_bounds = array<i64: 16, 32>}, {pipeline_mode = #tpu.pipeline_mode<synchronous>, transform_indices = @transform_1, window_bounds = array<i64: 1, 32>}, {pipeline_mode = #tpu.pipeline_mode<synchronous>, transform_indices = @transform_2, window_bounds = array<i64: 1, 32>}, {pipeline_mode = #tpu.pipeline_mode<synchronous>, transform_indices = @transform_3, window_bounds = array<i64: 32, 128>}, {pipeline_mode = #tpu.pipeline_mode<synchronous>, transform_indices = @transform_4, window_bounds = array<i64: 1, 128>}, {transform_indices = @transform_5, window_bounds = array<i64: 16, 128>}]} {
    %c0 = arith.constant 0 : index
    %c0_0 = arith.constant 0 : index
    %0 = vector.load %arg1[%c0, %c0_0] : memref<16x32xf32, #tpu.memory_space<vmem>>, vector<16x32xf32>
    %cst = arith.constant dense<0.000000e+00> : vector<16xf32>
    %1 = vector.multi_reduction <add>, %0, %cst [1] : vector<16x32xf32> to vector<16xf32>
    %2 = vector.shape_cast %1 : vector<16xf32> to vector<16x1xf32>
    %cst_1 = arith.constant 3.200000e+01 : f32
    %3 = vector.broadcast %cst_1 : f32 to vector<16x1xf32>
    %4 = arith.divf %2, %3 : vector<16x1xf32>
    %5 = vector.broadcast %4 : vector<16x1xf32> to vector<16x32xf32>
    %6 = arith.subf %0, %5 : vector<16x32xf32>
    %7 = arith.mulf %6, %6 : vector<16x32xf32>
    %cst_2 = arith.constant dense<0.000000e+00> : vector<16xf32>
    %8 = vector.multi_reduction <add>, %7, %cst_2 [1] : vector<16x32xf32> to vector<16xf32>
    %9 = vector.shape_cast %8 : vector<16xf32> to vector<16x1xf32>
    %cst_3 = arith.constant 3.200000e+01 : f32
    %10 = vector.broadcast %cst_3 : f32 to vector<16x1xf32>
    %11 = arith.divf %9, %10 : vector<16x1xf32>
    %cst_4 = arith.constant 9.99999974E-6 : f32
    %12 = vector.broadcast %cst_4 : f32 to vector<16x1xf32>
    %13 = arith.addf %11, %12 : vector<16x1xf32>
    %14 = math.rsqrt %13 : vector<16x1xf32>
    %15 = vector.broadcast %14 : vector<16x1xf32> to vector<16x32xf32>
    %16 = arith.mulf %6, %15 : vector<16x32xf32>
    %c0_5 = arith.constant 0 : index
    %c0_6 = arith.constant 0 : index
    %17 = vector.load %arg2[%c0_5, %c0_6] : memref<1x32xf32, #tpu.memory_space<vmem>>, vector<1x32xf32>
    %18 = vector.broadcast %17 : vector<1x32xf32> to vector<16x32xf32>
    %19 = arith.mulf %16, %18 : vector<16x32xf32>
    %c0_7 = arith.constant 0 : index
    %c0_8 = arith.constant 0 : index
    %20 = vector.load %arg3[%c0_7, %c0_8] : memref<1x32xf32, #tpu.memory_space<vmem>>, vector<1x32xf32>
    %21 = vector.broadcast %20 : vector<1x32xf32> to vector<16x32xf32>
    %22 = arith.addf %19, %21 : vector<16x32xf32>
    %23 = arith.truncf %22 : vector<16x32xf32> to vector<16x32xbf16>
    %c0_9 = arith.constant 0 : index
    %c0_10 = arith.constant 0 : index
    %24 = vector.load %arg4[%c0_9, %c0_10] : memref<32x128xbf16, #tpu.memory_space<vmem>>, vector<32x128xbf16>
    %cst_11 = arith.constant dense<0.000000e+00> : vector<16x128xf32>
    %25 = tpu.matmul %23, %24, %cst_11 {dimension_numbers = #tpu.dot_dimension_numbers<[1], [0], [0], [1], [0, 0, 1, 1], [], []>} : vector<16x32xbf16>, vector<32x128xbf16>, vector<16x128xf32> -> vector<16x128xf32>
    %c0_12 = arith.constant 0 : index
    %c0_13 = arith.constant 0 : index
    %26 = vector.load %arg5[%c0_12, %c0_13] : memref<1x128xf32, #tpu.memory_space<vmem>>, vector<1x128xf32>
    %27 = vector.broadcast %26 : vector<1x128xf32> to vector<16x128xf32>
    %28 = arith.addf %25, %27 : vector<16x128xf32>
    %c0_14 = arith.constant 0 : index
    %c0_15 = arith.constant 0 : index
    %29 = vector.load %arg6[%c0_14, %c0_15] : memref<16x128xf32, #tpu.memory_space<vmem>>, vector<16x128xf32>
    tpu.vector_store %arg6[%c0_14, %c0_15], %28 {strides = array<i32>} : memref<16x128xf32, #tpu.memory_space<vmem>>, vector<16x128xf32>,
    return
  }
  func.func @transform_0(%arg0: i32) -> (i32, i32) {
    %c0_i32 = arith.constant 0 : i32
    %c0_i32_0 = arith.constant 0 : i32
    return %arg0, %c0_i32 : i32, i32
  }
  func.func @transform_1(%arg0: i32) -> (i32, i32) {
    %c0_i32 = arith.constant 0 : i32
    %c0_i32_0 = arith.constant 0 : i32
    %c0_i32_1 = arith.constant 0 : i32
    return %c0_i32, %c0_i32_0 : i32, i32
  }
  func.func @transform_2(%arg0: i32) -> (i32, i32) {
    %c0_i32 = arith.constant 0 : i32
    %c0_i32_0 = arith.constant 0 : i32
    %c0_i32_1 = arith.constant 0 : i32
    return %c0_i32, %c0_i32_0 : i32, i32
  }
  func.func @transform_3(%arg0: i32) -> (i32, i32) {
    %c0_i32 = arith.constant 0 : i32
    %c0_i32_0 = arith.constant 0 : i32
    %c0_i32_1 = arith.constant 0 : i32
    return %c0_i32, %c0_i32_0 : i32, i32
  }
  func.func @transform_4(%arg0: i32) -> (i32, i32) {
    %c0_i32 = arith.constant 0 : i32
    %c0_i32_0 = arith.constant 0 : i32
    %c0_i32_1 = arith.constant 0 : i32
    return %c0_i32, %c0_i32_0 : i32, i32
  }
  func.func @transform_5(%arg0: i32) -> (i32, i32) {
    %c0_i32 = arith.constant 0 : i32
    %c0_i32_0 = arith.constant 0 : i32
    return %arg0, %c0_i32 : i32, i32
  }
}

</mosaic_0001>

<bundles_post_ra>
// kernel: decoder_forward.15
= control target key start
LH: loop header
LB: loop body
LE: loop exit
PB: predicated region body
PF: predicated region fallthrough
CT: control target
= control target key end

     0   :  { %vm19_vm0 = vcmask 261120   ;;  %v144_v0 = vmov 0.0   ;;  %vm145_vm1 = vmmov 0   ;;  %vm114_vm2 = vcmask 257024   ;;  %s192_s1 = inlined_call_operand.vmem [shape: bf16[32,32], index: 1, kind: input, shape index: {}]   ;;  %s193_s0 = inlined_call_operand.vmem [shape: f32[16,32], index: 0, kind: input, shape index: {}]   ;;  %s194_s2 = inlined_call_operand.vmem [shape: f32[1,32], index: 2, kind: input, shape index: {}]   ;;  %s195_s3 = inlined_call_operand.vmem [shape: bf16[16,32], index: 3, kind: output, shape index: {}]  }
   0x1   :  { %132 = vmatprep.subr.bf16.mxu0 %v144_v0  ;;  %v142_v1 = vld [vmem:[%s192_s1] sm:$0xff]   ;;  %136 = vmatprep.mubr.msk.bf16.mxu0 %vm145_vm1, %v144_v0  ;;  %20 = vst.msk [vmem:[#allocation2] sm:$0xff] %vm19_vm0, %v144_v0  ;;  %21 = vst.msk [vmem:[#allocation2 + $0x8] sm:$0xff] %vm19_vm0, %v144_v0  ;;  %v143_v2 = vld [vmem:[%s192_s1 + $0x8] sm:$0xff]  }
   0x2   :  { %133 = vmatpush3.bf16.msra.mxu0 %v142_v1  ;;  %v24_v3 = vld [vmem:[%s193_s0] sm:$0xff]  ;;  %v25_v4 = vld [vmem:[%s193_s0 + $0x8] sm:$0xff] }
   0x3   :  { %134 = vmatprep.subr.bf16.mxu0 %v144_v0  ;;  %v26_v5 = vpack.c.bf16 %v25_v4, %v24_v3  ;;  %v124_v14 = vld [vmem:[%s194_s2] ss:$0 sm:$0xff] }
   0x6   :  { %135 = vmatpush3.bf16.msra.mxu0 %v143_v2 }
   0x8   :  { %v22_v6 = vld [vmem:[#allocation2] sm:$0xff]  ;;  %v23_v8 = vld [vmem:[#allocation2 + $0x8] sm:$0xff] }
   0x9   :  { %137 = vmatmul.mubr.msk.bf16.vlgmr.msra.gmra.mrb[0].mxu0 %vm19_vm0, %v26_v5 }
  0xdc   :  { %v81_v7 = vpop.f32.mrb[0].mxu0 }
  0xdd   :  { %v88_v9 = vadd.f32 %v81_v7, %v22_v6  ;;  %v138_v10 = vpop.f32.mrb[1].mxu0 }
  0xde   :  { %v84_v11 = vpop.f32.mrb[2].mxu0 }
  0xdf   :  { %90 = vst.msk [vmem:[#allocation2] sm:$0xff] %vm19_vm0, %v88_v9  ;;  %v89_v12 = vadd.f32 %v84_v11, %v23_v8  ;;  %v139_v13 = vpop.f32.mrb[3].mxu0 }
  0xe1   :  { %91 = vst.msk [vmem:[#allocation2 + $0x8] sm:$0xff] %vm19_vm0, %v89_v12 }
  0xe6   :  { %v95_v15 = vld [vmem:[#allocation2] sm:$0xff] }
  0xe7   :  { %v104_v16 = vadd.f32 %v124_v14, %v95_v15 }
  0xe8   :  { %v96_v17 = vld [vmem:[#allocation2 + $0x8] sm:$0xff] }
  0xe9   :  { %v127_v18 = vpack.c.bf16 %v104_v16, %v104_v16  ;;  %v105_v19 = vadd.f32 %v124_v14, %v96_v17 }
  0xeb   :  { %115 = vst.msk [vmem:[%s195_s3] sm:$0xf] %vm114_vm2, %v127_v18  ;;  %v128_v20 = vpack.c.bf16 %v105_v19, %v105_v19 }
  0xed   :  { %116 = vst.msk [vmem:[%s195_s3 + $0x4] sm:$0xf] %vm114_vm2, %v128_v20 }

// kernel: decoder_forward.16
= control target key start
LH: loop header
LB: loop body
LE: loop exit
PB: predicated region body
PF: predicated region fallthrough
CT: control target
= control target key end

     0   :  { %vm19_vm0 = vcmask 523264   ;;  %v172_v1 = vmov 0.0   ;;  %vm47_vm1 = vcmask 261120   ;;  %vm138_vm2 = vcmask 519168   ;;  %s226_s1 = inlined_call_operand.vmem [shape: bf16[32,64], index: 1, kind: input, shape index: {}]   ;;  %s227_s0 = inlined_call_operand.vmem [shape: f32[24,32], index: 0, kind: input, shape index: {}]   ;;  %s228_s2 = inlined_call_operand.vmem [shape: f32[1,64], index: 2, kind: input, shape index: {}]   ;;  %s229_s3 = inlined_call_operand.vmem [shape: bf16[24,64], index: 3, kind: output, shape index: {}]  }
   0x1   :  { %v170_v0 = vld [vmem:[%s226_s1] sm:$0xff]   ;;  %22 = vst.msk [vmem:[#allocation2 + $0x10] sm:$0xff] %vm19_vm0, %v172_v1  ;;  %20 = vst.msk [vmem:[#allocation2] sm:$0xff] %vm19_vm0, %v172_v1  ;;  %v171_v2 = vld [vmem:[%s226_s1 + $0x8] sm:$0xff]  }
   0x2   :  { %21 = vst.msk [vmem:[#allocation2 + $0x8] sm:$0xff] %vm19_vm0, %v172_v1  ;;  %161 = vmatprep.subr.bf16.mxu0 %v170_v0  ;;  %v26_v3 = vld [vmem:[%s227_s0] sm:$0xff]  ;;  %v27_v4 = vld [vmem:[%s227_s0 + $0x8] sm:$0xff]  ;;  %v28_v5 = vld [vmem:[%s227_s0 + $0x10] sm:$0xff] }
   0x3   :  { %162 = vmatpush3.bf16.msra.mxu0 %v170_v0  ;;  %v29_v6 = vpack.c.bf16 %v27_v4, %v26_v3  ;;  %v30_v7 = vpack.c.bf16 %v28_v5, %v28_v5  ;;  %v150_v18 = vld [vmem:[%s228_s2] ss:$0 sm:$0xff] }
   0x4   :  { %163 = vmatprep.subr.bf16.mxu0 %v171_v2 }
   0x5   :  { %165 = vmatprep.mubr.msk.bf16.mxu0 %vm47_vm1, %v29_v6 }
   0x7   :  { %164 = vmatpush3.bf16.msra.mxu0 %v171_v2 }
   0x8   :  { %v25_v8 = vld [vmem:[#allocation2 + $0x10] sm:$0xff]  ;;  %v23_v9 = vld [vmem:[#allocation2] sm:$0xff] }
   0x9   :  { %v24_v13 = vld [vmem:[#allocation2 + $0x8] sm:$0xff] }
   0xa   :  { %166 = vmatmul.mubr.msk.bf16.vlgmr.msra.gmra.mrb[0].mxu0 %vm47_vm1, %v30_v7 }
  0xdd   :  { %v167_v10 = vpop.f32.mrb[0].mxu0 }
  0xde   :  { %v104_v11 = vadd.f32 %v167_v10, %v25_v8  ;;  %v88_v12 = vpop.f32.mrb[1].mxu0 }
  0xdf   :  { %v102_v14 = vadd.f32 %v88_v12, %v23_v9  ;;  %v168_v15 = vpop.f32.mrb[2].mxu0 }
  0xe0   :  { %108 = vst.msk [vmem:[#allocation2 + $0x10] sm:$0xff] %vm19_vm0, %v104_v11  ;;  %v91_v16 = vpop.f32.mrb[3].mxu0 }
  0xe1   :  { %106 = vst.msk [vmem:[#allocation2] sm:$0xff] %vm19_vm0, %v102_v14  ;;  %v103_v17 = vadd.f32 %v91_v16, %v24_v13 }
  0xe3   :  { %107 = vst.msk [vmem:[#allocation2 + $0x8] sm:$0xff] %vm19_vm0, %v103_v17 }
  0xe7   :  { %v114_v19 = vld [vmem:[#allocation2 + $0x10] sm:$0xff] }
  0xe8   :  { %v124_v20 = vadd.f32 %v150_v18, %v114_v19  ;;  %v112_v21 = vld [vmem:[#allocation2] sm:$0xff] }
  0xe9   :  { %v122_v22 = vadd.f32 %v150_v18, %v112_v21 }
  0xea   :  { %v156_v23 = vpack.c.bf16 %v124_v20, %v124_v20  ;;  %v113_v24 = vld [vmem:[#allocation2 + $0x8] sm:$0xff] }
  0xeb   :  { %v154_v25 = vpack.c.bf16 %v122_v22, %v122_v22  ;;  %v123_v26 = vadd.f32 %v150_v18, %v113_v24 }
  0xec   :  { %141 = vst.msk [vmem:[%s229_s3 + $0x8] sm:$0xf] %vm138_vm2, %v156_v23 }
  0xed   :  { %139 = vst.msk [vmem:[%s229_s3] sm:$0xf] %vm138_vm2, %v154_v25  ;;  %v155_v27 = vpack.c.bf16 %v123_v26, %v123_v26 }
  0xef   :  { %140 = vst.msk [vmem:[%s229_s3 + $0x4] sm:$0xf] %vm138_vm2, %v155_v27 }

// kernel: decoder_forward.13
= control target key start
LH: loop header
LB: loop body
LE: loop exit
PB: predicated region body
PF: predicated region fallthrough
CT: control target
= control target key end

     0   :  { %vm19_vm0 = vcmask 785408   ;;  %v145_v0 = vmov 0.0   ;;  %vm146_vm1 = vmmov 0   ;;  %vm43_vm2 = vcmask 261120   ;;  %s192_s1 = inlined_call_operand.vmem [shape: bf16[32,96], index: 1, kind: input, shape index: {}]   ;;  %s193_s0 = inlined_call_operand.vmem [shape: f32[16,32], index: 0, kind: input, shape index: {}]   ;;  %s194_s2 = inlined_call_operand.vmem [shape: f32[1,96], index: 2, kind: input, shape index: {}]   ;;  %s195_s3 = inlined_call_operand.vmem [shape: bf16[16,96], index: 3, kind: output, shape index: {}]  }
   0x1   :  { %133 = vmatprep.subr.bf16.mxu0 %v145_v0  ;;  %v143_v1 = vld [vmem:[%s192_s1] sm:$0xff]   ;;  %137 = vmatprep.mubr.msk.bf16.mxu0 %vm146_vm1, %v145_v0  ;;  %20 = vst.msk [vmem:[#allocation2] sm:$0xff] %vm19_vm0, %v145_v0  ;;  %21 = vst.msk [vmem:[#allocation2 + $0x8] sm:$0xff] %vm19_vm0, %v145_v0  ;;  %v144_v2 = vld [vmem:[%s192_s1 + $0x8] sm:$0xff]   ;;  %vm115_vm3 = vcmask 781312  }
   0x2   :  { %134 = vmatpush3.bf16.msra.mxu0 %v143_v1  ;;  %v24_v3 = vld [vmem:[%s193_s0] sm:$0xff]  ;;  %v25_v4 = vld [vmem:[%s193_s0 + $0x8] sm:$0xff] }
   0x3   :  { %135 = vmatprep.subr.bf16.mxu0 %v145_v0  ;;  %v26_v5 = vpack.c.bf16 %v25_v4, %v24_v3  ;;  %v125_v14 = vld [vmem:[%s194_s2] ss:$0 sm:$0xff] }
   0x6   :  { %136 = vmatpush3.bf16.msra.mxu0 %v144_v2 }
   0x8   :  { %v22_v6 = vld [vmem:[#allocation2] sm:$0xff]  ;;  %v23_v8 = vld [vmem:[#allocation2 + $0x8] sm:$0xff] }
   0x9   :  { %138 = vmatmul.mubr.msk.bf16.vlgmr.msra.gmra.mrb[0].mxu0 %vm43_vm2, %v26_v5 }
  0xdc   :  { %v81_v7 = vpop.f32.mrb[0].mxu0 }
  0xdd   :  { %v88_v9 = vadd.f32 %v81_v7, %v22_v6  ;;  %v139_v10 = vpop.f32.mrb[1].mxu0 }
  0xde   :  { %v84_v11 = vpop.f32.mrb[2].mxu0 }
  0xdf   :  { %91 = vst.msk [vmem:[#allocation2] sm:$0xff] %vm19_vm0, %v88_v9  ;;  %v89_v12 = vadd.f32 %v84_v11, %v23_v8  ;;  %v140_v13 = vpop.f32.mrb[3].mxu0 }
  0xe1   :  { %92 = vst.msk [vmem:[#allocation2 + $0x8] sm:$0xff] %vm19_vm0, %v89_v12 }
  0xe6   :  { %v96_v15 = vld [vmem:[#allocation2] sm:$0xff] }
  0xe7   :  { %v105_v16 = vadd.f32 %v125_v14, %v96_v15 }
  0xe8   :  { %v97_v17 = vld [vmem:[#allocation2 + $0x8] sm:$0xff] }
  0xe9   :  { %v128_v18 = vpack.c.bf16 %v105_v16, %v105_v16  ;;  %v106_v19 = vadd.f32 %v125_v14, %v97_v17 }
  0xeb   :  { %116 = vst.msk [vmem:[%s195_s3] sm:$0xf] %vm115_vm3, %v128_v18  ;;  %v129_v20 = vpack.c.bf16 %v106_v19, %v106_v19 }
  0xed   :  { %117 = vst.msk [vmem:[%s195_s3 + $0x4] sm:$0xf] %vm115_vm3, %v129_v20 }

// kernel: decoder_forward.14
= control target key start
LH: loop header
LB: loop body
LE: loop exit
PB: predicated region body
PF: predicated region fallthrough
CT: control target
= control target key end

     0   :  { %s1208_s21 = smov 0   ;;  %s1210_s22 = smov 0   ;;  %s1351_s0 = inlined_call_operand.vmem [shape: bf16[2,8,96], index: 0, kind: input, shape index: {}]   ;;  %s1352_s1 = inlined_call_operand.vmem [shape: f32[2,8,32], index: 1, kind: input, shape index: {}]   ;;  %s1353_s2 = inlined_call_operand.vmem [shape: bf16[32,32], index: 2, kind: input, shape index: {}]   ;;  %s1354_s3 = inlined_call_operand.vmem [shape: f32[1,32], index: 3, kind: input, shape index: {}]   ;;  %s1355_s4 = inlined_call_operand.vmem [shape: f32[1,32], index: 4, kind: input, shape index: {}]   ;;  %s1356_s5 = inlined_call_operand.vmem [shape: f32[1,32], index: 5, kind: input, shape index: {}]   ;;  %s1357_s6 = inlined_call_operand.vmem [shape: f32[2,8,32], index: 6, kind: output, shape index: {}]  }
   0x1   :  { %s1212_s23 = smov 0  }
   0x2 LB: > { %s28_s24 = sadd.s32 1, %s1151_s22  ;;  %p974_p0 = scmp.ge.s32.totalorder %s1155_s23, 1  ;;  %s1155_s23 = sphi %s1212_s23, %s16_s23   ;;  %s1151_s22 = sphi %s1210_s22, %s1359_s22   ;;  %s1147_s21 = sphi %s1208_s21, %s1358_s21  }
   0x3   : > { %p30_p1 = scmp.ge.s32.totalorder %s28_s24, 2  ;;  %p239_p2 = scmp.lt.s32.totalorder %s1155_s23, 3 }
   0x5   : > { %s1361_s24 = smov (%p30_p1, %s28_s24), 0  ;;  %p240_p3 = pnand %p974_p0, %p239_p2 }
   0x6   : > { %p277_p4 = scmp.lt.s32.totalorder (!%p240_p3), %s1147_s21, 1  ;;  %v1157_v0 = vmov (!%p240_p3), 0.0   ;;  %vm1158_vm0 = vmmov (!%p240_p3), 0   ;;  %s1159_s29 = smov (!%p240_p3), 96   ;;  %vm315_vm1 = vcmask (!%p240_p3), 64512   ;;  %v304_v5 = vlaneseq (!%p240_p3) }
   0x7   : > { %243 = sbr.rel (%p240_p3) target bundleno = 2132 (0x854), region = 44  ;;  %1015 = vmatprep.subr.bf16.mxu0 (!%p240_p3), %v1157_v0  ;;  %1017 = vmatprep.mubr.msk.bf16.mxu0 (!%p240_p3), %vm1158_vm0, %v1157_v0  ;;  %s1160_s30 = smov (!%p240_p3), 64   ;;  %vm382_vm3 = vcmask (!%p240_p3), 1043456   ;;  %vm778_vm4 = vcmask (!%p240_p3), 130048   ;;  %vm780_vm5 = vcmask (!%p240_p3), 195584   ;;  %vm806_vm6 = vcmask (!%p240_p3), 261120  }
   0x8   : > { %1021 = vmatprep.subr.bf16.mxu1 (!%p240_p3), %v1157_v0  ;;  %1023 = vmatprep.mubr.msk.bf16.mxu1 (!%p240_p3), %vm1158_vm0, %v1157_v0  ;;  %s1161_s7 = smov (!%p240_p3), 88   ;;  %v1248_v6 = vshrl.u32 (!%p240_p3), %v304_v5, 7  ;;  %v1250_v7 = vand.u32 (!%p240_p3), 127, %v304_v5  ;;  %s1162_s8 = smov (!%p240_p3), 72  }
   0x9   : > { %s1163_s9 = smov (!%p240_p3), 120   ;;  %s1164_s10 = smov (!%p240_p3), 80  }
   0xa   : > { %vm363_vm2 = vcmp.gt.s32.totalorder (!%p240_p3), %v1250_v7, %v1248_v6  ;;  %s1165_s11 = smov (!%p240_p3), 112   ;;  %s1166_s12 = smov (!%p240_p3), 104  }
   0xb   : > { %s1167_s13 = smov (!%p240_p3), 56   ;;  %s1168_s14 = smov (!%p240_p3), 48  }
   0xc   : > { %s1169_s15 = smov (!%p240_p3), 40   ;;  %s1170_s16 = smov (!%p240_p3), 8  }
   0xd   : > { %s1172_s26 = smov (!%p240_p3), 24  }
   0xe   : > { %s1363_s21 = smov (!%p277_p4, %s1147_s21), 1 }
   0xf   : > { %s975_s25 = sshll.u32 %s1363_s21, 2  ;;  %s976_s27 = sshll.u32 %s1363_s21, 3 }
  0x10   : > { %s280_s28 = scalar_lea.vmem %s1351_s0, %s975_s25  ;;  %s1171_s25 = smov 16  }
  0x11   : > { %v1238_v1 = vld [vmem:[%s280_s28] ss:$0 sps:$4 sm:$0xff]  }
  0x12   : > { %313 = vrot.lane.b32.xlu0 %v1238_v1, %s1159_s29  ;;  %v301_v4 = vld [vmem:[%s280_s28] sm:$0xf]  ;;  %377 = vrot.lane.b32.xlu1 %v1238_v1, %s1160_s30  ;;  %s287_s30 = scalar_lea.vmem %s1352_s1, %s976_s27 }
  0x13   : > { %v981_v22 = vcombine.low %v301_v4, %v301_v4 }
  0x16   : > { %431 = vrot.lane.b32.xlu1 %v1238_v1, %s1161_s7 }
  0x84   : > { %v314_v2 = vpop.permute.xlu0 %313  ;;  %v378_v15 = vpop.permute.xlu1 %377 }
  0x85   : > { %v320_v3 = vsel %vm315_vm1, %v314_v2, 0  ;;  %v384_v16 = vsel %vm382_vm3, %v378_v15, 0 }
  0x86   : > { %1016 = vmatpush3.bf16.xpose.msra.mxu0 %v320_v3  ;;  %1022 = vmatpush3.bf16.msra.mxu1 %v384_v16 }
  0x87   : > { %1033 = vmatprep.subr.bf16.mxu0 %v1157_v0  ;;  %1027 = vmatprep.subr.bf16.mxu1 %v1157_v0 }
  0x88   : > { %v432_v23 = vpop.permute.xlu1 %431 }
  0x89   : > { %v437_v29 = vsel %vm315_vm1, %v432_v23, 0 }
  0x8d   : > { %1018 = vmatmul.mubr.msk.bf16.vlgmr.msra.gmra.mrb[0].mxu0 %vm315_vm1, %v301_v4 }
  0x8e   : > { %1035 = vmatprep.mubr.msk.bf16.mxu0 %vm1158_vm0, %v1157_v0 }
 0x160   : > { %v356_v8 = vpop.f32.mrb[0].mxu0 }
 0x161   : > { %v362_v9 = vmul.f32 0.35355338, %v356_v8  ;;  %v1019_v10 = vpop.f32.mrb[1].mxu0 }
 0x162   : > { %v359_v11 = vpop.f32.mrb[2].mxu0 }
 0x163   : > { %v1020_v12 = vpop.f32.mrb[3].mxu0  ;;  %v364_v13 = vsel %vm363_vm2, -1e+30, %v362_v9 }
 0x164   : > { %v365_v14 = vsel %vm315_vm1, %v364_v13, -inf }
 0x165   : > { %366 = vmax.xlane.f32.xlu0 %v365_v14 }
 0x17b   : > { %655 = vrot.lane.b32.xlu0 %v1238_v1, %s1162_s8 }
 0x1f2   : > { %v367_v17 = vpop.xlane.xlu0 %366 }
 0x1f3   : > { %v368_v18 = vsub.f32 %v364_v13, %v367_v17 }
 0x1f5   : > { %v369_v19 = vmul.f32 1.442695, %v368_v18 }
 0x1f6   : > { %v656_v32 = vpop.permute.xlu0 %655 }
 0x1f7   : > { %1115 = vpow2.f32 %v369_v19  ;;  %v661_v34 = vsel %vm315_vm1, %v656_v32, 0 }
 0x201   : > { %v1116_v20 = vpop.eup %1115 }
 0x202   : > { %v371_v21 = vsel %vm315_vm1, %v1116_v20, 0.0 }
 0x203   : > { %372 = vadd.xlane.f32.xlu1 %v371_v21 }
 0x214   : > { %429 = vrot.lane.b32.xlu1 %v981_v22, %s1163_s9 }
 0x218   : > { %543 = vrot.lane.b32.xlu1 %v1238_v1, %s1164_s10 }
 0x21c   : > { %541 = vrot.lane.b32.xlu1 %v981_v22, %s1165_s11 }
 0x220   : > { %653 = vrot.lane.b32.xlu1 %v981_v22, %s1166_s12 }
 0x290   : > { %v373_v24 = vpop.xlane.xlu1 %372 }
 0x291   : > { %1117 = vrcp.f32 %v373_v24 }
 0x294   : > { %v430_v27 = vpop.permute.xlu1 %429 }
 0x298   : > { %v544_v30 = vpop.permute.xlu1 %543 }
 0x299   : > { %v549_v31 = vsel %vm315_vm1, %v544_v30, 0 }
 0x29b   : > { %v1118_v25 = vpop.eup %1117 }
 0x29c   : > { %v375_v26 = vmul.f32 %v1118_v25, %v1116_v20  ;;  %v542_v33 = vpop.permute.xlu1 %541 }
 0x29e   : > { %v376_v28 = vpack.c.bf16 %v375_v26, %v375_v26 }
 0x2a0   : > { %1024 = vmatmul.mubr.msk.bf16.vlgmr.msra.gmra.mrb[0].mxu1 %vm315_vm1, %v376_v28  ;;  %v654_v35 = vpop.permute.xlu1 %653 }
 0x2a1   : > { %1028 = vmatpush3.bf16.xpose.msra.mxu1 %v437_v29  ;;  %1029 = vmatprep.mubr.msk.bf16.mxu1 %vm1158_vm0, %v1157_v0 }
 0x2a2   : > { %1039 = vmatprep.subr.bf16.mxu1 %v1157_v0 }
 0x2a8   : > { %1030 = vmatmul.mubr.msk.bf16.vlgmr.msra.gmra.mrb[4].mxu1 %vm315_vm1, %v430_v27 }
 0x2a9   : > { %1040 = vmatpush3.bf16.xpose.msra.mxu1 %v549_v31  ;;  %1041 = vmatprep.mubr.msk.bf16.mxu1 %vm1158_vm0, %v1157_v0 }
 0x2aa   : > { %1051 = vmatprep.subr.bf16.mxu1 %v1157_v0 }
 0x2b0   : > { %1042 = vmatmul.mubr.msk.bf16.vlgmr.msra.gmra.mrb[8].mxu1 %vm315_vm1, %v542_v33 }
 0x2b1   : > { %1052 = vmatpush3.bf16.xpose.msra.mxu1 %v661_v34  ;;  %1053 = vmatprep.mubr.msk.bf16.mxu1 %vm1158_vm0, %v1157_v0 }
 0x2b2   : > { %1063 = vmatprep.subr.bf16.mxu1 %v1157_v0 }
 0x2b8   : > { %1054 = vmatmul.mubr.msk.bf16.vlgmr.msra.gmra.mrb[12].mxu1 %vm315_vm1, %v654_v35  ;;  %v1113_v35 = vld [vmem:[%s1353_s2] sm:$0xff]  }
 0x2b9   : > { %1067 = vmatprep.mubr.msk.bf16.mxu1 %vm1158_vm0, %v1157_v0  ;;  %1064 = vmatpush3.bf16.msra.mxu1 %v1113_v35 }
 0x2ba   : > { %1065 = vmatprep.subr.bf16.mxu1 %v1157_v0 }
 0x373   : > { %v1281_v36 = vpop.f32.mrb[0].mxu1 }
 0x374   : > { %v1025_v37 = vpop.f32.mrb[1].mxu1 }
 0x375   : > { %v423_v38 = vpop.f32.mrb[2].mxu1  ;;  %v1114_v37 = vld [vmem:[%s1353_s2 + $0x8] sm:$0xff]  }
 0x376   : > { %v1026_v39 = vpop.f32.mrb[3].mxu1  ;;  %1066 = vmatpush3.bf16.msra.mxu1 %v1114_v37 }
 0x37b   : > { %v473_v40 = vpop.f32.mrb[4].mxu1 }
 0x37c   : > { %v479_v41 = vmul.f32 0.35355338, %v473_v40  ;;  %v1031_v42 = vpop.f32.mrb[5].mxu1 }
 0x37d   : > { %v476_v43 = vpop.f32.mrb[6].mxu1 }
 0x37e   : > { %v1032_v44 = vpop.f32.mrb[7].mxu1  ;;  %v480_v45 = vsel %vm363_vm2, -1e+30, %v479_v41 }
 0x37f   : > { %v481_v46 = vsel %vm315_vm1, %v480_v45, -inf }
 0x380   : > { %482 = vmax.xlane.f32.xlu1 %v481_v46 }
 0x383   : > { %v585_v47 = vpop.f32.mrb[8].mxu1 }
 0x384   : > { %v591_v48 = vmul.f32 0.35355338, %v585_v47  ;;  %v1043_v49 = vpop.f32.mrb[9].mxu1 }
 0x385   : > { %v588_v50 = vpop.f32.mrb[10].mxu1 }
 0x386   : > { %v592_v51 = vsel %vm363_vm2, -1e+30, %v591_v48  ;;  %v1044_v52 = vpop.f32.mrb[11].mxu1 }
 0x387   : > { %v593_v53 = vsel %vm315_vm1, %v592_v51, -inf  ;;  %v988_v52 = vld [vmem:[%s1354_s3] ss:$0 sm:$0xff] }
 0x388   : > { %594 = vmax.xlane.f32.xlu0 %v593_v53 }
 0x38b   : > { %v697_v54 = vpop.f32.mrb[12].mxu1 }
 0x38c   : > { %v703_v55 = vmul.f32 0.35355338, %v697_v54  ;;  %v1055_v56 = vpop.f32.mrb[13].mxu1  ;;  %v303_v54 = vld [vmem:[%s287_s30] sm:$0xff] }
 0x38d   : > { %v700_v57 = vpop.f32.mrb[14].mxu1 }
 0x38e   : > { %v704_v58 = vsel %vm363_vm2, -1e+30, %v703_v55  ;;  %v1056_v59 = vpop.f32.mrb[15].mxu1 }
 0x38f   : > { %v705_v60 = vsel %vm315_vm1, %v704_v58, -inf }
 0x390   : > { %706 = vmax.xlane.f32.xlu1 %v705_v60 }
 0x40d   : > { %v483_v61 = vpop.xlane.xlu1 %482 }
 0x40e   : > { %v484_v62 = vsub.f32 %v480_v45, %v483_v61 }
 0x410   : > { %v485_v63 = vmul.f32 1.442695, %v484_v62 }
 0x412   : > { %1119 = vpow2.f32 %v485_v63 }
 0x415   : > { %v595_v7 = vpop.xlane.xlu0 %594 }
 0x416   : > { %v596_v10 = vsub.f32 %v592_v51, %v595_v7  ;;  %v993_v7 = vld [vmem:[%s1356_s5] ss:$0 sm:$0xff] }
 0x418   : > { %v597_v11 = vmul.f32 1.442695, %v596_v10 }
 0x41c   : > { %v1120_v2 = vpop.eup %1119 }
 0x41d   : > { %v707_v3 = vpop.xlane.xlu1 %706  ;;  %v487_v4 = vsel %vm315_vm1, %v1120_v2, 0.0 }
 0x41e   : > { %v708_v5 = vsub.f32 %v704_v58, %v707_v3  ;;  %488 = vadd.xlane.f32.xlu1 %v487_v4 }
 0x420   : > { %v709_v8 = vmul.f32 1.442695, %v708_v5 }
 0x422   : > { %1121 = vpow2.f32 %v709_v8 }
 0x423   : > { %1123 = vpow2.f32 %v597_v11 }
 0x42c   : > { %v1122_v9 = vpop.eup %1121 }
 0x42d   : > { %v711_v6 = vsel %vm315_vm1, %v1122_v9, 0.0  ;;  %v1124_v12 = vpop.eup %1123 }
 0x42e   : > { %712 = vadd.xlane.f32.xlu0 %v711_v6  ;;  %v599_v13 = vsel %vm315_vm1, %v1124_v12, 0.0 }
 0x42f   : > { %493 = vrot.lane.b32.xlu1 %v1238_v1, %s1167_s13 }
 0x444   : > { %605 = vrot.lane.b32.xlu0 %v1238_v1, %s1168_s14  ;;  %s294_s14 = scalar_lea.vmem %s1357_s6, %s976_s27 }
 0x453   : > { %600 = vadd.xlane.f32.xlu1 %v599_v13 }
 0x464   : > { %717 = vrot.lane.b32.xlu1 %v1238_v1, %s1169_s15 }
 0x4ab   : > { %v489_v14 = vpop.xlane.xlu1 %488 }
 0x4ac   : > { %1125 = vrcp.f32 %v489_v14 }
 0x4af   : > { %v494_v15 = vpop.permute.xlu1 %493 }
 0x4b0   : > { %v499_v16 = vsel %vm382_vm3, %v494_v15, 0 }
 0x4b1   : > { %1034 = vmatpush3.bf16.msra.mxu0 %v499_v16 }
 0x4b2   : > { %1045 = vmatprep.subr.bf16.mxu0 %v1157_v0 }
 0x4b6   : > { %v1126_v17 = vpop.eup %1125 }
 0x4b7   : > { %v491_v18 = vmul.f32 %v1126_v17, %v1120_v2 }
 0x4b9   : > { %v492_v19 = vpack.c.bf16 %v491_v18, %v491_v18 }
 0x4bb   : > { %1036 = vmatmul.mubr.msk.bf16.vlgmr.msra.gmra.mrb[4].mxu0 %vm315_vm1, %v492_v19  ;;  %v713_v20 = vpop.xlane.xlu0 %712 }
 0x4bc   : > { %1047 = vmatprep.mubr.msk.bf16.mxu0 %vm1158_vm0, %v1157_v0 }
 0x4bf   : > { %v606_v21 = vpop.permute.xlu0 %605 }
 0x4c0   : > { %v611_v1 = vsel %vm382_vm3, %v606_v21, 0 }
 0x4c1   : > { %1046 = vmatpush3.bf16.msra.mxu0 %v611_v1 }
 0x4c2   : > { %1057 = vmatprep.subr.bf16.mxu0 %v1157_v0 }
 0x4e0   : > { %v601_v22 = vpop.xlane.xlu1 %600 }
 0x4e1   : > { %1127 = vrcp.f32 %v601_v22 }
 0x4e2   : > { %1129 = vrcp.f32 %v713_v20 }
 0x4e4   : > { %v718_v24 = vpop.permute.xlu1 %717 }
 0x4e5   : > { %v723_v26 = vsel %vm382_vm3, %v718_v24, 0 }
 0x4eb   : > { %v1128_v23 = vpop.eup %1127 }
 0x4ec   : > { %v603_v25 = vmul.f32 %v1128_v23, %v1124_v12  ;;  %v1130_v28 = vpop.eup %1129 }
 0x4ed   : > { %v715_v29 = vmul.f32 %v1130_v28, %v1122_v9  ;;  %v992_v9 = vld [vmem:[%s1355_s4] ss:$0 sm:$0xff] }
 0x4ee   : > { %v604_v27 = vpack.c.bf16 %v603_v25, %v603_v25 }
 0x4ef   : > { %v716_v30 = vpack.c.bf16 %v715_v29, %v715_v29 }
 0x4f0   : > { %1048 = vmatmul.mubr.msk.bf16.vlgmr.msra.gmra.mrb[8].mxu0 %vm315_vm1, %v604_v27 }
 0x4f1   : > { %1058 = vmatpush3.bf16.msra.mxu0 %v723_v26  ;;  %1059 = vmatprep.mubr.msk.bf16.mxu0 %vm1158_vm0, %v1157_v0 }
 0x4f8   : > { %1060 = vmatmul.mubr.msk.bf16.vlgmr.msra.gmra.mrb[12].mxu0 %vm315_vm1, %v716_v30 }
 0x58e   : > { %v535_v31 = vpop.f32.mrb[4].mxu0 }
 0x58f   : > { %766 = vrot.lane.b32.xlu1 %v535_v31, %s1170_s16  ;;  %v1037_v32 = vpop.f32.mrb[5].mxu0 }
 0x590   : > { %v538_v33 = vpop.f32.mrb[6].mxu0 }
 0x591   : > { %v1038_v34 = vpop.f32.mrb[7].mxu0 }
 0x5c3   : > { %v647_v38 = vpop.f32.mrb[8].mxu0 }
 0x5c4   : > { %770 = vrot.lane.b32.xlu0 %v647_v38, %s1171_s25  ;;  %v1049_v39 = vpop.f32.mrb[9].mxu0 }
 0x5c5   : > { %v650_v40 = vpop.f32.mrb[10].mxu0 }
 0x5c6   : > { %v1050_v41 = vpop.f32.mrb[11].mxu0 }
 0x5cb   : > { %v759_v42 = vpop.f32.mrb[12].mxu0 }
 0x5cc   : > { %774 = vrot.lane.b32.xlu1 %v759_v42, %s1172_s26  ;;  %v1061_v43 = vpop.f32.mrb[13].mxu0 }
 0x5cd   : > { %v762_v44 = vpop.f32.mrb[14].mxu0 }
 0x5ce   : > { %v1062_v45 = vpop.f32.mrb[15].mxu0 }
 0x601   : > { %v767_v46 = vpop.permute.xlu1 %766 }
 0x602   : > { %v777_v0 = vsel %vm315_vm1, %v1281_v36, %v767_v46 }
 0x636   : > { %v771_v47 = vpop.permute.xlu0 %770 }
 0x637   : > { %v779_v48 = vsel %vm778_vm4, %v777_v0, %v771_v47 }
 0x63e   : > { %v775_v49 = vpop.permute.xlu1 %774 }
 0x63f   : > { %v781_v50 = vsel %vm780_vm5, %v779_v48, %v775_v49 }
 0x640   : > { %v782_v51 = vpack.c.bf16 %v781_v50, %v781_v50 }
 0x642   : > { %1068 = vmatmul.mubr.msk.bf16.vlgmr.msra.gmra.mrb[16].mxu1 %vm806_vm6, %v782_v51 }
 0x715   : > { %v844_v53 = vpop.f32.mrb[16].mxu1 }
 0x716   : > { %v845_v55 = vadd.f32 %v988_v52, %v844_v53  ;;  %v1069_v36 = vpop.f32.mrb[17].mxu1 }
 0x717   : > { %v847_v56 = vpop.f32.mrb[18].mxu1 }
 0x718   : > { %v1070_v57 = vpop.f32.mrb[19].mxu1  ;;  %v850_v58 = vadd.f32 %v845_v55, %v303_v54 }
 0x71a   : > { %v851_v59 = vsel %vm806_vm6, %v850_v58, 0.0 }
 0x71b   : > { %852 = vadd.xlane.f32.xlu0 %v851_v59 }
 0x7a8   : > { %v853_v60 = vpop.xlane.xlu0 %852 }
 0x7a9   : > { %v855_v61 = vmul.f32 0.03125, %v853_v60 }
 0x7ab   : > { %v856_v62 = vsub.f32 %v850_v58, %v855_v61 }
 0x7ad   : > { %v857_v63 = vmul.f32 %v856_v62, %v856_v62 }
 0x7af   : > { %v858_v2 = vsel %vm806_vm6, %v857_v63, 0.0 }
 0x7b0   : > { %859 = vadd.xlane.f32.xlu1 %v858_v2 }
 0x83d   : > { %v860_v3 = vpop.xlane.xlu1 %859 }
 0x83e   : > { %v861_v4 = vmul.f32 0.03125, %v860_v3 }
 0x840   : > { %v862_v5 = vadd.f32 1e-05, %v861_v4 }
 0x842   : > { %1131 = vrsqrt.f32 %v862_v5 }
 0x84c   : > { %v1132_v8 = vpop.eup %1131 }
 0x84d   : > { %v864_v6 = vmul.f32 %v1132_v8, %v856_v62 }
 0x84f   : > { %v872_v10 = vmul.f32 %v992_v9, %v864_v6 }
 0x851   : > { %v880_v11 = vadd.f32 %v993_v7, %v872_v10 }
 0x853   : > { %881 = vst.msk [vmem:[%s294_s14] sm:$0xff] %vm806_vm6, %v880_v11 }
 0x854 PF: > { %s16_s23 = sadd.s32 1, %s1155_s23   ;;  %s1358_s21 = smov %s1151_s22 }
 0x855   : > { %p13_p5 = scmp.ge.s32.totalorder %s16_s23, 4   ;;  %s1359_s22 = smov %s1361_s24 }
 0x857   :  { %15 = sbr.rel (!%p13_p5) target bundleno = 2 (0x2), region = 78 }

// kernel: decoder_forward.18
= control target key start
LH: loop header
LB: loop body
LE: loop exit
PB: predicated region body
PF: predicated region fallthrough
CT: control target
= control target key end

     0   :  { %v290_v0 = vmov 0.0   ;;  %vm291_vm0 = vmmov 0   ;;  %vm53_vm1 = vcmask 261120   ;;  %vm140_vm2 = vcmask 523264   ;;  %s381_s1 = inlined_call_operand.vmem [shape: bf16[32,64], index: 1, kind: input, shape index: {}]   ;;  %s382_s0 = inlined_call_operand.vmem [shape: f32[16,32], index: 0, kind: input, shape index: {}]   ;;  %s383_s3 = inlined_call_operand.vmem [shape: bf16[64,32], index: 3, kind: input, shape index: {}]   ;;  %s384_s2 = inlined_call_operand.vmem [shape: f32[1,64], index: 2, kind: input, shape index: {}]   ;;  %s385_s4 = inlined_call_operand.vmem [shape: f32[1,32], index: 4, kind: input, shape index: {}]   ;;  %s386_s5 = inlined_call_operand.vmem [shape: f32[1,32], index: 5, kind: input, shape index: {}]   ;;  %s387_s6 = inlined_call_operand.vmem [shape: f32[1,32], index: 6, kind: input, shape index: {}]   ;;  %s388_s7 = inlined_call_operand.vmem [shape: f32[16,32], index: 7, kind: output, shape index: {}]  }
   0x1   :  { %258 = vmatprep.subr.bf16.mxu0 %v290_v0  ;;  %v280_v1 = vld [vmem:[%s381_s1] sm:$0xff]   ;;  %262 = vmatprep.mubr.msk.bf16.mxu0 %vm291_vm0, %v290_v0  ;;  %v281_v2 = vld [vmem:[%s381_s1 + $0x8] sm:$0xff]   ;;  %v284_v8 = vld [vmem:[%s383_s3 + $0x10] sm:$0xff]  }
   0x2   :  { %266 = vmatprep.subr.bf16.mxu1 %v290_v0  ;;  %274 = vmatprep.mubr.msk.bf16.mxu1 %vm291_vm0, %v290_v0  ;;  %v27_v3 = vld [vmem:[%s382_s0] sm:$0xff]  ;;  %v28_v4 = vld [vmem:[%s382_s0 + $0x8] sm:$0xff]  ;;  %v285_v9 = vld [vmem:[%s383_s3 + $0x18] sm:$0xff]  }
   0x3   :  { %259 = vmatpush3.bf16.msra.mxu0 %v280_v1  ;;  %v282_v5 = vld [vmem:[%s383_s3] sm:$0xff]   ;;  %v283_v6 = vld [vmem:[%s383_s3 + $0x8] sm:$0xff]   ;;  %v29_v7 = vpack.c.bf16 %v28_v4, %v27_v3 }
   0x4   :  { %260 = vmatprep.subr.bf16.mxu0 %v290_v0  ;;  %267 = vmatpush3.bf16.msra.mxu1 %v282_v5  ;;  %v238_v10 = vld [vmem:[%s384_s2] ss:$0 sm:$0xff] }
   0x5   :  { %268 = vmatprep.subr.bf16.mxu1 %v290_v0  ;;  %v242_v20 = vld [vmem:[%s385_s4] ss:$0 sm:$0xff] }
   0x6   :  { %v248_v48 = vld [vmem:[%s386_s5] ss:$0 sm:$0xff] }
   0x7   :  { %261 = vmatpush3.bf16.msra.mxu0 %v281_v2  ;;  %v249_v50 = vld [vmem:[%s387_s6] ss:$0 sm:$0xff] }
   0x8   :  { %269 = vmatpush3.bf16.msra.mxu1 %v283_v6 }
   0x9   :  { %270 = vmatprep.subr.bf16.mxu1 %v290_v0 }
   0xa   :  { %263 = vmatmul.mubr.msk.bf16.vlgmr.msra.gmra.mrb[0].mxu0 %vm53_vm1, %v29_v7 }
   0xc   :  { %271 = vmatpush3.bf16.msra.mxu1 %v284_v8 }
   0xd   :  { %272 = vmatprep.subr.bf16.mxu1 %v290_v0 }
  0x10   :  { %273 = vmatpush3.bf16.msra.mxu1 %v285_v9 }
  0xdd   :  { %v91_v11 = vpop.f32.mrb[0].mxu0 }
  0xde   :  { %v92_v12 = vadd.f32 %v238_v10, %v91_v11  ;;  %v264_v13 = vpop.f32.mrb[1].mxu0 }
  0xdf   :  { %v94_v14 = vpop.f32.mrb[2].mxu0 }
  0xe0   :  { %v95_v15 = vadd.f32 %v238_v10, %v94_v14  ;;  %v265_v16 = vpop.f32.mrb[3].mxu0  ;;  %v98_v17 = vmax.f32 %v92_v12, 0.0 }
  0xe2   :  { %v99_v18 = vmax.f32 %v95_v15, 0.0 }
  0xe4   :  { %v100_v19 = vpack.c.bf16 %v99_v18, %v98_v17 }
  0xe6   :  { %275 = vmatmul.mubr.msk.bf16.vlgmr.msra.gmra.mrb[0].mxu1 %vm140_vm2, %v100_v19 }
 0x1b9   :  { %v178_v21 = vpop.f32.mrb[0].mxu1 }
 0x1ba   :  { %v179_v22 = vadd.f32 %v242_v20, %v178_v21  ;;  %v276_v23 = vpop.f32.mrb[1].mxu1 }
 0x1bb   :  { %v181_v24 = vpop.f32.mrb[2].mxu1 }
 0x1bc   :  { %v182_v25 = vadd.f32 %v242_v20, %v181_v24  ;;  %v277_v26 = vpop.f32.mrb[3].mxu1  ;;  %v185_v27 = vadd.f32 %v179_v22, %v27_v3 }
 0x1be   :  { %v187_v28 = vsel %vm53_vm1, %v185_v27, 0.0  ;;  %v186_v29 = vadd.f32 %v182_v25, %v28_v4 }
 0x1bf   :  { %188 = vadd.xlane.f32.xlu0 %v187_v28 }
 0x1c0   :  { %v190_v30 = vsel %vm53_vm1, %v186_v29, 0.0 }
 0x1c3   :  { %191 = vadd.xlane.f32.xlu0 %v190_v30 }
 0x24c   :  { %v189_v31 = vpop.xlane.xlu0 %188 }
 0x24d   :  { %v194_v32 = vmul.f32 0.03125, %v189_v31 }
 0x24f   :  { %v196_v33 = vsub.f32 %v185_v27, %v194_v32 }
 0x250   :  { %v192_v34 = vpop.xlane.xlu0 %191 }
 0x251   :  { %v195_v35 = vmul.f32 0.03125, %v192_v34  ;;  %v198_v36 = vmul.f32 %v196_v33, %v196_v33 }
 0x253   :  { %v197_v37 = vsub.f32 %v186_v29, %v195_v35  ;;  %v200_v38 = vsel %vm53_vm1, %v198_v36, 0.0 }
 0x254   :  { %201 = vadd.xlane.f32.xlu1 %v200_v38 }
 0x255   :  { %v199_v39 = vmul.f32 %v197_v37, %v197_v37 }
 0x257   :  { %v203_v40 = vsel %vm53_vm1, %v199_v39, 0.0 }
 0x258   :  { %204 = vadd.xlane.f32.xlu1 %v203_v40 }
 0x2e1   :  { %v202_v41 = vpop.xlane.xlu1 %201 }
 0x2e2   :  { %v206_v42 = vmul.f32 0.03125, %v202_v41 }
 0x2e4   :  { %v208_v43 = vadd.f32 1e-05, %v206_v42 }
 0x2e5   :  { %v205_v44 = vpop.xlane.xlu1 %204 }
 0x2e6   :  { %286 = vrsqrt.f32 %v208_v43  ;;  %v207_v45 = vmul.f32 0.03125, %v205_v44 }
 0x2e8   :  { %v209_v46 = vadd.f32 1e-05, %v207_v45 }
 0x2ea   :  { %288 = vrsqrt.f32 %v209_v46 }
 0x2f0   :  { %v287_v47 = vpop.eup %286 }
 0x2f1   :  { %v212_v49 = vmul.f32 %v287_v47, %v196_v33 }
 0x2f3   :  { %v221_v51 = vmul.f32 %v248_v48, %v212_v49 }
 0x2f4   :  { %v289_v52 = vpop.eup %288 }
 0x2f5   :  { %v230_v53 = vadd.f32 %v249_v50, %v221_v51  ;;  %v213_v54 = vmul.f32 %v289_v52, %v197_v37 }
 0x2f7   :  { %232 = vst.msk [vmem:[%s388_s7] sm:$0xff] %vm53_vm1, %v230_v53  ;;  %v222_v55 = vmul.f32 %v248_v48, %v213_v54 }
 0x2f9   :  { %v231_v56 = vadd.f32 %v249_v50, %v222_v55 }
 0x2fb   :  { %233 = vst.msk [vmem:[%s388_s7 + $0x8] sm:$0xff] %vm53_vm1, %v231_v56 }

// kernel: decoder_forward.17
= control target key start
LH: loop header
LB: loop body
LE: loop exit
PB: predicated region body
PF: predicated region fallthrough
CT: control target
= control target key end

     0   :  { %s1265_s24 = smov 0   ;;  %s1267_s25 = smov 0   ;;  %s1394_s0 = inlined_call_operand.vmem [shape: bf16[2,8,32], index: 0, kind: input, shape index: {}]   ;;  %s1395_s1 = inlined_call_operand.vmem [shape: bf16[2,12,64], index: 1, kind: input, shape index: {}]   ;;  %s1396_s2 = inlined_call_operand.vmem [shape: f32[2,8,32], index: 2, kind: input, shape index: {}]   ;;  %s1397_s3 = inlined_call_operand.vmem [shape: bf16[32,32], index: 3, kind: input, shape index: {}]   ;;  %s1398_s4 = inlined_call_operand.vmem [shape: f32[1,32], index: 4, kind: input, shape index: {}]   ;;  %s1399_s5 = inlined_call_operand.vmem [shape: f32[1,32], index: 5, kind: input, shape index: {}]   ;;  %s1400_s6 = inlined_call_operand.vmem [shape: f32[1,32], index: 6, kind: input, shape index: {}]   ;;  %s1401_s7 = inlined_call_operand.vmem [shape: f32[2,8,32], index: 7, kind: output, shape index: {}]  }
   0x1   :  { %s1269_s26 = smov 0  }
   0x2 LB: > { %s29_s27 = sadd.s32 1, %s1207_s25  ;;  %p1031_p0 = scmp.ge.s32.totalorder %s1211_s26, 1  ;;  %s1211_s26 = sphi %s1269_s26, %s17_s26   ;;  %s1207_s25 = sphi %s1267_s25, %s1403_s25   ;;  %s1203_s24 = sphi %s1265_s24, %s1402_s24  }
   0x3   : > { %p31_p1 = scmp.ge.s32.totalorder %s29_s27, 2  ;;  %p279_p2 = scmp.lt.s32.totalorder %s1211_s26, 3 }
   0x5   : > { %s1405_s27 = smov (%p31_p1, %s29_s27), 0  ;;  %p280_p3 = pnand %p1031_p0, %p279_p2 }
   0x6   : > { %p327_p4 = scmp.lt.s32.totalorder (!%p280_p3), %s1203_s24, 1  ;;  %v1213_v0 = vmov (!%p280_p3), 0.0   ;;  %vm1214_vm0 = vmmov (!%p280_p3), 0   ;;  %vm363_vm1 = vcmask (!%p280_p3), 64512   ;;  %vm411_vm2 = vcmask (!%p280_p3), 97280   ;;  %s1215_s13 = smov (!%p280_p3), 96  }
   0x7   : > { %283 = sbr.rel (%p280_p3) target bundleno = 1971 (0x7b3), region = 48  ;;  %1075 = vmatprep.subr.bf16.mxu0 (!%p280_p3), %v1213_v0  ;;  %1077 = vmatprep.mubr.msk.bf16.mxu0 (!%p280_p3), %vm1214_vm0, %v1213_v0  ;;  %s1216_s14 = smov (!%p280_p3), 120   ;;  %vm429_vm3 = vcmask (!%p280_p3), 1045504   ;;  %vm822_vm4 = vcmask (!%p280_p3), 130048   ;;  %vm824_vm5 = vcmask (!%p280_p3), 195584   ;;  %vm850_vm6 = vcmask (!%p280_p3), 261120  }
   0x8   : > { %1081 = vmatprep.subr.bf16.mxu1 (!%p280_p3), %v1213_v0  ;;  %1083 = vmatprep.mubr.msk.bf16.mxu1 (!%p280_p3), %vm1214_vm0, %v1213_v0  ;;  %s1217_s15 = smov (!%p280_p3), 112   ;;  %s1218_s16 = smov (!%p280_p3), 104  }
   0x9   : > { %s1219_s17 = smov (!%p280_p3), 88   ;;  %s1220_s18 = smov (!%p280_p3), 72  }
   0xa   : > { %s1221_s19 = smov (!%p280_p3), 80   ;;  %s1222_s22 = smov (!%p280_p3), 8  }
   0xb   : > { %s1223_s29 = smov (!%p280_p3), 16   ;;  %s1224_s30 = smov (!%p280_p3), 24  }
   0xe   : > { %s1407_s24 = smov (!%p327_p4, %s1203_s24), 1 }
   0xf   : > { %s1289_s28 = sshll.u32 %s1407_s24, 3  ;;  %s1032_s9 = sshll.u32 %s1407_s24, 2 }
  0x10   : > { %s338_s8 = scalar_lea.vmem %s1395_s1, %s1289_s28  ;;  %s333_s12 = scalar_lea.vmem %s1394_s0, %s1032_s9 }
  0x11   : > { %v1295_v1 = vld [vmem:[%s338_s8] sm:$0x3f]   ;;  %s345_s10 = scalar_lea.vmem %s1396_s2, %s1289_s28 }
  0x12   : > { %v368_v2 = vsel %vm363_vm1, %v1295_v1, 0  ;;  %v356_v3 = vld [vmem:[%s333_s12] sm:$0xf]  ;;  %424 = vrot.lane.b32.xlu1 %v1295_v1, %s1215_s13 }
  0x13   : > { %1076 = vmatpush3.bf16.xpose.msra.mxu0 %v368_v2  ;;  %v1040_v10 = vcombine.low %v356_v3, %v356_v3 }
  0x14   : > { %1093 = vmatprep.subr.bf16.mxu0 %v1213_v0 }
  0x16   : > { %478 = vrot.lane.b32.xlu1 %v1295_v1, %s1216_s14 }
  0x1a   : > { %1078 = vmatmul.mubr.msk.bf16.vlgmr.msra.gmra.mrb[0].mxu0 %vm363_vm1, %v356_v3  ;;  %589 = vrot.lane.b32.xlu1 %v1295_v1, %s1217_s15 }
  0x1b   : > { %1095 = vmatprep.mubr.msk.bf16.mxu0 %vm1214_vm0, %v1213_v0 }
  0x1e   : > { %587 = vrot.lane.b32.xlu1 %v1040_v10, %s1217_s15 }
  0x22   : > { %700 = vrot.lane.b32.xlu1 %v1295_v1, %s1218_s16 }
  0x26   : > { %698 = vrot.lane.b32.xlu1 %v1040_v10, %s1218_s16 }
  0x84   : > { %v425_v16 = vpop.permute.xlu1 %424 }
  0x85   : > { %v431_v17 = vsel %vm429_vm3, %v425_v16, 0 }
  0x86   : > { %1082 = vmatpush3.bf16.msra.mxu1 %v431_v17 }
  0x87   : > { %1087 = vmatprep.subr.bf16.mxu1 %v1213_v0 }
  0x88   : > { %v479_v20 = vpop.permute.xlu1 %478 }
  0x89   : > { %v484_v22 = vsel %vm363_vm1, %v479_v20, 0 }
  0x8c   : > { %v590_v24 = vpop.permute.xlu1 %589 }
  0x8d   : > { %v595_v27 = vsel %vm363_vm1, %v590_v24, 0 }
  0x90   : > { %v588_v26 = vpop.permute.xlu1 %587 }
  0x94   : > { %v701_v28 = vpop.permute.xlu1 %700 }
  0x95   : > { %v706_v29 = vsel %vm363_vm1, %v701_v28, 0  ;;  %v1170_v28 = vld [vmem:[%s1397_s3 + $0x8] sm:$0xff]  }
  0x98   : > { %v699_v30 = vpop.permute.xlu1 %698 }
  0xed   : > { %v404_v4 = vpop.f32.mrb[0].mxu0 }
  0xee   : > { %v410_v5 = vmul.f32 0.35355338, %v404_v4  ;;  %v1079_v6 = vpop.f32.mrb[1].mxu0 }
  0xef   : > { %v407_v7 = vpop.f32.mrb[2].mxu0 }
  0xf0   : > { %v1080_v8 = vpop.f32.mrb[3].mxu0  ;;  %v412_v9 = vsel %vm411_vm2, %v410_v5, -inf }
  0xf1   : > { %413 = vmax.xlane.f32.xlu0 %v412_v9 }
 0x17e   : > { %v414_v11 = vpop.xlane.xlu0 %413 }
 0x17f   : > { %v415_v12 = vsub.f32 %v410_v5, %v414_v11 }
 0x181   : > { %v416_v13 = vmul.f32 1.442695, %v415_v12 }
 0x183   : > { %1171 = vpow2.f32 %v416_v13 }
 0x18d   : > { %v1172_v14 = vpop.eup %1171 }
 0x18e   : > { %v418_v15 = vsel %vm411_vm2, %v1172_v14, 0.0 }
 0x18f   : > { %419 = vadd.xlane.f32.xlu0 %v418_v15 }
 0x1a5   : > { %476 = vrot.lane.b32.xlu0 %v1040_v10, %s1216_s14 }
 0x21c   : > { %v420_v18 = vpop.xlane.xlu0 %419 }
 0x21d   : > { %1173 = vrcp.f32 %v420_v18 }
 0x220   : > { %v477_v25 = vpop.permute.xlu0 %476 }
 0x227   : > { %v1174_v19 = vpop.eup %1173 }
 0x228   : > { %v422_v21 = vmul.f32 %v1174_v19, %v1172_v14 }
 0x22a   : > { %v423_v23 = vpack.c.bf16 %v422_v21, %v422_v21 }
 0x22c   : > { %1084 = vmatmul.mubr.msk.bf16.vlgmr.msra.gmra.mrb[0].mxu1 %vm411_vm2, %v423_v23  ;;  %v1169_v23 = vld [vmem:[%s1397_s3] sm:$0xff]  }
 0x22d   : > { %1088 = vmatpush3.bf16.xpose.msra.mxu1 %v484_v22  ;;  %1089 = vmatprep.mubr.msk.bf16.mxu1 %vm1214_vm0, %v1213_v0 }
 0x22e   : > { %1099 = vmatprep.subr.bf16.mxu1 %v1213_v0 }
 0x234   : > { %1090 = vmatmul.mubr.msk.bf16.vlgmr.msra.gmra.mrb[4].mxu1 %vm363_vm1, %v477_v25 }
 0x235   : > { %1100 = vmatpush3.bf16.xpose.msra.mxu1 %v595_v27  ;;  %1101 = vmatprep.mubr.msk.bf16.mxu1 %vm1214_vm0, %v1213_v0 }
 0x236   : > { %1111 = vmatprep.subr.bf16.mxu1 %v1213_v0 }
 0x23c   : > { %1102 = vmatmul.mubr.msk.bf16.vlgmr.msra.gmra.mrb[8].mxu1 %vm363_vm1, %v588_v26 }
 0x23d   : > { %1112 = vmatpush3.bf16.xpose.msra.mxu1 %v706_v29  ;;  %1113 = vmatprep.mubr.msk.bf16.mxu1 %vm1214_vm0, %v1213_v0 }
 0x23e   : > { %1123 = vmatprep.subr.bf16.mxu1 %v1213_v0 }
 0x244   : > { %1114 = vmatmul.mubr.msk.bf16.vlgmr.msra.gmra.mrb[12].mxu1 %vm363_vm1, %v699_v30 }
 0x245   : > { %1127 = vmatprep.mubr.msk.bf16.mxu1 %vm1214_vm0, %v1213_v0  ;;  %1124 = vmatpush3.bf16.msra.mxu1 %v1169_v23 }
 0x246   : > { %1125 = vmatprep.subr.bf16.mxu1 %v1213_v0 }
 0x249   : > { %1126 = vmatpush3.bf16.msra.mxu1 %v1170_v28 }
 0x2ff   : > { %v1332_v31 = vpop.f32.mrb[0].mxu1 }
 0x300   : > { %v1085_v32 = vpop.f32.mrb[1].mxu1 }
 0x301   : > { %v470_v33 = vpop.f32.mrb[2].mxu1 }
 0x302   : > { %v1086_v34 = vpop.f32.mrb[3].mxu1 }
 0x307   : > { %v520_v35 = vpop.f32.mrb[4].mxu1 }
 0x308   : > { %v526_v36 = vmul.f32 0.35355338, %v520_v35  ;;  %v1091_v37 = vpop.f32.mrb[5].mxu1 }
 0x309   : > { %v523_v38 = vpop.f32.mrb[6].mxu1 }
 0x30a   : > { %v1092_v39 = vpop.f32.mrb[7].mxu1  ;;  %v527_v40 = vsel %vm411_vm2, %v526_v36, -inf }
 0x30b   : > { %528 = vmax.xlane.f32.xlu1 %v527_v40 }
 0x30f   : > { %v631_v41 = vpop.f32.mrb[8].mxu1 }
 0x310   : > { %v637_v42 = vmul.f32 0.35355338, %v631_v41  ;;  %v1103_v43 = vpop.f32.mrb[9].mxu1 }
 0x311   : > { %v634_v44 = vpop.f32.mrb[10].mxu1 }
 0x312   : > { %v1104_v45 = vpop.f32.mrb[11].mxu1  ;;  %v638_v46 = vsel %vm411_vm2, %v637_v42, -inf  ;;  %v1047_v44 = vld [vmem:[%s1398_s4] ss:$0 sm:$0xff] }
 0x313   : > { %639 = vmax.xlane.f32.xlu0 %v638_v46  ;;  %v357_v46 = vld [vmem:[%s345_s10] sm:$0xff] }
 0x317   : > { %v742_v47 = vpop.f32.mrb[12].mxu1 }
 0x318   : > { %v748_v48 = vmul.f32 0.35355338, %v742_v47  ;;  %v1115_v49 = vpop.f32.mrb[13].mxu1 }
 0x319   : > { %v745_v50 = vpop.f32.mrb[14].mxu1 }
 0x31a   : > { %v1116_v51 = vpop.f32.mrb[15].mxu1  ;;  %v749_v52 = vsel %vm411_vm2, %v748_v48, -inf }
 0x31b   : > { %750 = vmax.xlane.f32.xlu1 %v749_v52 }
 0x32c   : > { %539 = vrot.lane.b32.xlu1 %v1295_v1, %s1219_s17 }
 0x398   : > { %v529_v53 = vpop.xlane.xlu1 %528 }
 0x399   : > { %v530_v54 = vsub.f32 %v526_v36, %v529_v53 }
 0x39b   : > { %v531_v55 = vmul.f32 1.442695, %v530_v54 }
 0x39d   : > { %1175 = vpow2.f32 %v531_v55 }
 0x3a0   : > { %v640_v56 = vpop.xlane.xlu0 %639 }
 0x3a1   : > { %v641_v57 = vsub.f32 %v637_v42, %v640_v56 }
 0x3a3   : > { %v642_v58 = vmul.f32 1.442695, %v641_v57 }
 0x3a5   : > { %1177 = vpow2.f32 %v642_v58 }
 0x3a7   : > { %v1176_v59 = vpop.eup %1175 }
 0x3a8   : > { %v751_v60 = vpop.xlane.xlu1 %750  ;;  %v533_v61 = vsel %vm411_vm2, %v1176_v59, 0.0 }
 0x3a9   : > { %v752_v62 = vsub.f32 %v748_v48, %v751_v60  ;;  %534 = vadd.xlane.f32.xlu0 %v533_v61  ;;  %v1051_v61 = vld [vmem:[%s1399_s5] ss:$0 sm:$0xff] }
 0x3ab   : > { %v753_v63 = vmul.f32 1.442695, %v752_v62 }
 0x3ac   : > { %v540_v2 = vpop.permute.xlu1 %539 }
 0x3ad   : > { %1179 = vpow2.f32 %v753_v63  ;;  %v545_v3 = vsel %vm429_vm3, %v540_v2, 0  ;;  %v1052_v63 = vld [vmem:[%s1400_s6] ss:$0 sm:$0xff] }
 0x3ae   : > { %1094 = vmatpush3.bf16.msra.mxu0 %v545_v3 }
 0x3af   : > { %v1178_v4 = vpop.eup %1177  ;;  %1105 = vmatprep.subr.bf16.mxu0 %v1213_v0 }
 0x3b0   : > { %v644_v5 = vsel %vm411_vm2, %v1178_v4, 0.0 }
 0x3b1   : > { %645 = vadd.xlane.f32.xlu1 %v644_v5 }
 0x3b7   : > { %v1180_v6 = vpop.eup %1179 }
 0x3b8   : > { %v755_v7 = vsel %vm411_vm2, %v1180_v6, 0.0 }
 0x3b9   : > { %756 = vadd.xlane.f32.xlu0 %v755_v7 }
 0x3c2   : > { %761 = vrot.lane.b32.xlu1 %v1295_v1, %s1220_s18 }
 0x3cf   : > { %650 = vrot.lane.b32.xlu0 %v1295_v1, %s1221_s19  ;;  %s352_s19 = scalar_lea.vmem %s1401_s7, %s1289_s28 }
 0x436   : > { %v535_v8 = vpop.xlane.xlu0 %534 }
 0x437   : > { %1181 = vrcp.f32 %v535_v8 }
 0x43e   : > { %v646_v9 = vpop.xlane.xlu1 %645 }
 0x43f   : > { %1183 = vrcp.f32 %v646_v9 }
 0x441   : > { %v1182_v10 = vpop.eup %1181 }
 0x442   : > { %v537_v11 = vmul.f32 %v1182_v10, %v1176_v59  ;;  %v762_v17 = vpop.permute.xlu1 %761 }
 0x443   : > { %v767_v19 = vsel %vm429_vm3, %v762_v17, 0 }
 0x444   : > { %v538_v12 = vpack.c.bf16 %v537_v11, %v537_v11 }
 0x446   : > { %v757_v13 = vpop.xlane.xlu0 %756  ;;  %1096 = vmatmul.mubr.msk.bf16.vlgmr.msra.gmra.mrb[4].mxu0 %vm411_vm2, %v538_v12 }
 0x447   : > { %1185 = vrcp.f32 %v757_v13  ;;  %1107 = vmatprep.mubr.msk.bf16.mxu0 %vm1214_vm0, %v1213_v0 }
 0x449   : > { %v1184_v14 = vpop.eup %1183 }
 0x44a   : > { %v648_v15 = vmul.f32 %v1184_v14, %v1178_v4  ;;  %v651_v16 = vpop.permute.xlu0 %650 }
 0x44b   : > { %v656_v1 = vsel %vm429_vm3, %v651_v16, 0 }
 0x44c   : > { %1106 = vmatpush3.bf16.msra.mxu0 %v656_v1  ;;  %v649_v18 = vpack.c.bf16 %v648_v15, %v648_v15 }
 0x44d   : > { %1117 = vmatprep.subr.bf16.mxu0 %v1213_v0 }
 0x44f   : > { %1108 = vmatmul.mubr.msk.bf16.vlgmr.msra.gmra.mrb[8].mxu0 %vm411_vm2, %v649_v18 }
 0x450   : > { %1118 = vmatpush3.bf16.msra.mxu0 %v767_v19  ;;  %1119 = vmatprep.mubr.msk.bf16.mxu0 %vm1214_vm0, %v1213_v0 }
 0x451   : > { %v1186_v20 = vpop.eup %1185 }
 0x452   : > { %v759_v21 = vmul.f32 %v1186_v20, %v1180_v6 }
 0x454   : > { %v760_v22 = vpack.c.bf16 %v759_v21, %v759_v21 }
 0x457   : > { %1120 = vmatmul.mubr.msk.bf16.vlgmr.msra.gmra.mrb[12].mxu0 %vm411_vm2, %v760_v22 }
 0x519   : > { %v581_v24 = vpop.f32.mrb[4].mxu0 }
 0x51a   : > { %810 = vrot.lane.b32.xlu1 %v581_v24, %s1222_s22  ;;  %v1097_v25 = vpop.f32.mrb[5].mxu0 }
 0x51b   : > { %v584_v26 = vpop.f32.mrb[6].mxu0 }
 0x51c   : > { %v1098_v27 = vpop.f32.mrb[7].mxu0 }
 0x522   : > { %v692_v29 = vpop.f32.mrb[8].mxu0 }
 0x523   : > { %814 = vrot.lane.b32.xlu0 %v692_v29, %s1223_s29  ;;  %v1109_v30 = vpop.f32.mrb[9].mxu0 }
 0x524   : > { %v695_v32 = vpop.f32.mrb[10].mxu0 }
 0x525   : > { %v1110_v33 = vpop.f32.mrb[11].mxu0 }
 0x52a   : > { %v803_v34 = vpop.f32.mrb[12].mxu0 }
 0x52b   : > { %818 = vrot.lane.b32.xlu1 %v803_v34, %s1224_s30  ;;  %v1121_v0 = vpop.f32.mrb[13].mxu0 }
 0x52c   : > { %v806_v35 = vpop.f32.mrb[14].mxu0 }
 0x52d   : > { %v1122_v36 = vpop.f32.mrb[15].mxu0 }
 0x58c   : > { %v811_v37 = vpop.permute.xlu1 %810 }
 0x58d   : > { %v821_v39 = vsel %vm363_vm1, %v1332_v31, %v811_v37 }
 0x595   : > { %v815_v38 = vpop.permute.xlu0 %814 }
 0x596   : > { %v823_v40 = vsel %vm822_vm4, %v821_v39, %v815_v38 }
 0x59d   : > { %v819_v41 = vpop.permute.xlu1 %818 }
 0x59e   : > { %v825_v42 = vsel %vm824_vm5, %v823_v40, %v819_v41 }
 0x59f   : > { %v826_v43 = vpack.c.bf16 %v825_v42, %v825_v42 }
 0x5a1   : > { %1128 = vmatmul.mubr.msk.bf16.vlgmr.msra.gmra.mrb[16].mxu1 %vm850_vm6, %v826_v43 }
 0x674   : > { %v888_v45 = vpop.f32.mrb[16].mxu1 }
 0x675   : > { %v889_v47 = vadd.f32 %v1047_v44, %v888_v45  ;;  %v1129_v48 = vpop.f32.mrb[17].mxu1 }
 0x676   : > { %v891_v31 = vpop.f32.mrb[18].mxu1 }
 0x677   : > { %v1130_v49 = vpop.f32.mrb[19].mxu1  ;;  %v894_v50 = vadd.f32 %v889_v47, %v357_v46 }
 0x679   : > { %v895_v51 = vsel %vm850_vm6, %v894_v50, 0.0 }
 0x67a   : > { %896 = vadd.xlane.f32.xlu0 %v895_v51 }
 0x707   : > { %v897_v52 = vpop.xlane.xlu0 %896 }
 0x708   : > { %v899_v53 = vmul.f32 0.03125, %v897_v52 }
 0x70a   : > { %v900_v54 = vsub.f32 %v894_v50, %v899_v53 }
 0x70c   : > { %v901_v55 = vmul.f32 %v900_v54, %v900_v54 }
 0x70e   : > { %v902_v56 = vsel %vm850_vm6, %v901_v55, 0.0 }
 0x70f   : > { %903 = vadd.xlane.f32.xlu1 %v902_v56 }
 0x79c   : > { %v904_v57 = vpop.xlane.xlu1 %903 }
 0x79d   : > { %v905_v58 = vmul.f32 0.03125, %v904_v57 }
 0x79f   : > { %v906_v59 = vadd.f32 1e-05, %v905_v58 }
 0x7a1   : > { %1187 = vrsqrt.f32 %v906_v59 }
 0x7ab   : > { %v1188_v60 = vpop.eup %1187 }
 0x7ac   : > { %v908_v62 = vmul.f32 %v1188_v60, %v900_v54 }
 0x7ae   : > { %v916_v2 = vmul.f32 %v1051_v61, %v908_v62 }
 0x7b0   : > { %v924_v3 = vadd.f32 %v1052_v63, %v916_v2 }
 0x7b2   : > { %925 = vst.msk [vmem:[%s352_s19] sm:$0xff] %vm850_vm6, %v924_v3 }
 0x7b3 PF: > { %s17_s26 = sadd.s32 1, %s1211_s26   ;;  %s1402_s24 = smov %s1207_s25 }
 0x7b4   : > { %p14_p5 = scmp.ge.s32.totalorder %s17_s26, 4   ;;  %s1403_s25 = smov %s1405_s27 }
 0x7b6   :  { %16 = sbr.rel (!%p14_p5) target bundleno = 2 (0x2), region = 84 }

// kernel: decoder_forward.25
= control target key start
LH: loop header
LB: loop body
LE: loop exit
PB: predicated region body
PF: predicated region fallthrough
CT: control target
= control target key end

     0   :  { %vm23_vm0 = vcmask 261120   ;;  %v168_v15 = vmov 0.0   ;;  %vm169_vm1 = vmmov 0   ;;  %s232_s0 = inlined_call_operand.vmem [shape: f32[16,32], index: 0, kind: input, shape index: {}]   ;;  %s233_s3 = inlined_call_operand.vmem [shape: bf16[32,128], index: 3, kind: input, shape index: {}]   ;;  %s234_s1 = inlined_call_operand.vmem [shape: f32[1,32], index: 1, kind: input, shape index: {}]   ;;  %s235_s2 = inlined_call_operand.vmem [shape: f32[1,32], index: 2, kind: input, shape index: {}]   ;;  %s236_s4 = inlined_call_operand.vmem [shape: f32[1,128], index: 4, kind: input, shape index: {}]   ;;  %s237_s5 = inlined_call_operand.vmem [shape: f32[16,128], index: 5, kind: output, shape index: {}]  }
   0x1   :  { %v21_v0 = vld [vmem:[%s232_s0] sm:$0xff]  ;;  %v22_v1 = vld [vmem:[%s232_s0 + $0x8] sm:$0xff]  ;;  %152 = vmatprep.subr.bf16.mxu0 %v168_v15  ;;  %156 = vmatprep.mubr.msk.bf16.mxu0 %vm169_vm1, %v168_v15 }
   0x2   :  { %v24_v2 = vsel %vm23_vm0, %v21_v0, 0.0  ;;  %v27_v3 = vsel %vm23_vm0, %v22_v1, 0.0  ;;  %v162_v14 = vld [vmem:[%s233_s3] sm:$0xff]   ;;  %v163_v16 = vld [vmem:[%s233_s3 + $0x8] sm:$0xff]  }
   0x3   :  { %25 = vadd.xlane.f32.xlu0 %v24_v2  ;;  %153 = vmatpush3.bf16.msra.mxu0 %v162_v14  ;;  %v143_v25 = vld [vmem:[%s234_s1] ss:$0 sm:$0xff] }
   0x4   :  { %154 = vmatprep.subr.bf16.mxu0 %v168_v15  ;;  %v144_v29 = vld [vmem:[%s235_s2] ss:$0 sm:$0xff] }
   0x5   :  { %v145_v34 = vld [vmem:[%s236_s4] ss:$0 sm:$0xff] }
   0x7   :  { %28 = vadd.xlane.f32.xlu0 %v27_v3  ;;  %155 = vmatpush3.bf16.msra.mxu0 %v163_v16 }
  0x90   :  { %v26_v4 = vpop.xlane.xlu0 %25 }
  0x91   :  { %v31_v5 = vmul.f32 0.03125, %v26_v4 }
  0x93   :  { %v33_v6 = vsub.f32 %v21_v0, %v31_v5 }
  0x94   :  { %v29_v7 = vpop.xlane.xlu0 %28 }
  0x95   :  { %v32_v8 = vmul.f32 0.03125, %v29_v7  ;;  %v35_v9 = vmul.f32 %v33_v6, %v33_v6 }
  0x97   :  { %v34_v10 = vsub.f32 %v22_v1, %v32_v8  ;;  %v37_v11 = vsel %vm23_vm0, %v35_v9, 0.0 }
  0x98   :  { %38 = vadd.xlane.f32.xlu1 %v37_v11 }
  0x99   :  { %v36_v12 = vmul.f32 %v34_v10, %v34_v10 }
  0x9b   :  { %v40_v13 = vsel %vm23_vm0, %v36_v12, 0.0 }
  0x9c   :  { %41 = vadd.xlane.f32.xlu1 %v40_v13 }
 0x125   :  { %v39_v17 = vpop.xlane.xlu1 %38 }
 0x126   :  { %v43_v18 = vmul.f32 0.03125, %v39_v17 }
 0x128   :  { %v45_v19 = vadd.f32 1e-05, %v43_v18 }
 0x129   :  { %v42_v20 = vpop.xlane.xlu1 %41 }
 0x12a   :  { %164 = vrsqrt.f32 %v45_v19  ;;  %v44_v21 = vmul.f32 0.03125, %v42_v20 }
 0x12c   :  { %v46_v22 = vadd.f32 1e-05, %v44_v21 }
 0x12e   :  { %166 = vrsqrt.f32 %v46_v22 }
 0x134   :  { %v165_v23 = vpop.eup %164 }
 0x135   :  { %v49_v24 = vmul.f32 %v165_v23, %v33_v6 }
 0x137   :  { %v58_v28 = vmul.f32 %v143_v25, %v49_v24 }
 0x138   :  { %v167_v26 = vpop.eup %166 }
 0x139   :  { %v50_v27 = vmul.f32 %v167_v26, %v34_v10  ;;  %v67_v31 = vadd.f32 %v144_v29, %v58_v28 }
 0x13b   :  { %v59_v30 = vmul.f32 %v143_v25, %v50_v27 }
 0x13d   :  { %v68_v32 = vadd.f32 %v144_v29, %v59_v30 }
 0x13f   :  { %v69_v33 = vpack.c.bf16 %v68_v32, %v67_v31 }
 0x141   :  { %157 = vmatmul.mubr.msk.bf16.vlgmr.msra.gmra.mrb[0].mxu0 %vm23_vm0, %v69_v33 }
 0x214   :  { %v130_v35 = vpop.f32.mrb[0].mxu0 }
 0x215   :  { %v131_v36 = vadd.f32 %v145_v34, %v130_v35  ;;  %v158_v37 = vpop.f32.mrb[1].mxu0 }
 0x216   :  { %v133_v38 = vpop.f32.mrb[2].mxu0 }
 0x217   :  { %137 = vst [vmem:[%s237_s5] sm:$0xff] %v131_v36  ;;  %v134_v39 = vadd.f32 %v145_v34, %v133_v38  ;;  %v159_v40 = vpop.f32.mrb[3].mxu0 }
 0x219   :  { %138 = vst [vmem:[%s237_s5 + $0x8] sm:$0xff] %v134_v39 }

</bundles_post_ra>
